<compile_context>
chip_gen: v7x
topology: tpu7x:2x2x1
jax: 0.10.0
libtpu: 0.0.40
codegen_flags: <defaults>
</compile_context>

<pallas_src>
import functools

import numpy as np
import jax
import jax.numpy as jnp
from jax import lax
from jax.experimental import pallas as pl
from jax.experimental.pallas import tpu as pltpu


def _round_up(x: int, m: int) -> int:
    return ((x + m - 1) // m) * m


def _mhca_kernel(x_ref, d_ref, wq_ref, bq_ref, wk_ref, bk_ref, wv_ref, bv_ref,
                 wp_ref, bp_ref, o_ref, attn_ref, *,
                 heads, head_dim, bb, n_data_valid, mask_keys):
    tq = x_ref.shape[1]
    ndp = d_ref.shape[1]
    data_width = d_ref.shape[2]
    width = heads * head_dim

    # ---- Input projections: whole batch-block flattened -> tall MXU matmuls. ----
    # bf16 operands (single MXU pass), f32 accumulation, f32 bias add.
    xf = x_ref[...].reshape(bb * tq, width).astype(jnp.bfloat16)
    df = d_ref[...].reshape(bb * ndp, data_width).astype(jnp.bfloat16)

    # 1/sqrt(head_dim) is pre-folded into wq/bq on the host.
    q = (jnp.dot(xf, wq_ref[...], preferred_element_type=jnp.float32)
         + bq_ref[...]).astype(jnp.bfloat16)
    k = (jnp.dot(df, wk_ref[...], preferred_element_type=jnp.float32)
         + bk_ref[...]).astype(jnp.bfloat16)
    v = (jnp.dot(df, wv_ref[...], preferred_element_type=jnp.float32)
         + bv_ref[...]).astype(jnp.bfloat16)

    if mask_keys:
        key_ok = lax.broadcasted_iota(jnp.int32, (1, ndp), 1) < n_data_valid

    # ---- Attention core: short static loop over (sample, head). ----
    for s in range(bb):
        qs = q[s * tq:(s + 1) * tq, :]
        ks = k[s * ndp:(s + 1) * ndp, :]
        vs = v[s * ndp:(s + 1) * ndp, :]
        for h in range(heads):
            c0 = h * head_dim
            qh = qs[:, c0:c0 + head_dim]
            kh = ks[:, c0:c0 + head_dim]
            vh = vs[:, c0:c0 + head_dim]
            # scores = qh @ kh^T (scale already folded into q); f32 accumulation.
            sc = lax.dot_general(qh, kh, (((1,), (1,)), ((), ())),
                                 preferred_element_type=jnp.float32)
            if mask_keys:
                sc = jnp.where(key_ok, sc, jnp.float32(-1e30))
            m = jnp.max(sc, axis=-1, keepdims=True)
            p = jnp.exp(sc - m)
            p = p * pl.reciprocal(jnp.sum(p, axis=-1, keepdims=True), approx=True)
            oh = jnp.dot(p.astype(jnp.bfloat16), vh,
                         preferred_element_type=jnp.float32)
            # Head-contiguous store into the attention slab (static offsets).
            attn_ref[s * tq:(s + 1) * tq, c0:c0 + head_dim] = oh

    # ---- One K=width output projection over the whole slab + bias. ----
    out = jnp.dot(attn_ref[...].astype(jnp.bfloat16), wp_ref[...],
                  preferred_element_type=jnp.float32) + bp_ref[...]
    o_ref[...] = out.reshape(bb, tq, width).astype(o_ref.dtype)


def multihead_cross_attention(x, data, wq, bq, wkv, bkv, wp, bp, *, heads,
                              batch_block=8, q_block=256):
    """Pallas forward of MultiheadCrossAttention (qkv_bias=True, qk_norm=False).

    Weights are stored (in_features, out_features); biases may be (out,) or (1, out).
    """
    B, n_ctx, width = x.shape
    _, n_data, data_width = data.shape
    assert width % heads == 0
    head_dim = width // heads
    assert wq.shape == (width, width)
    assert wkv.shape == (data_width, 2 * width)
    assert wp.shape == (width, width)

    f32 = jnp.float32

    # ---- Host-side weight plumbing (free layout work). ----
    scale = 1.0 / np.sqrt(head_dim)
    wq_s = (wq.astype(f32) * scale).astype(jnp.bfloat16)
    bq_s = bq.reshape(1, width).astype(f32) * scale
    # De-interleave c_kv: output columns are laid out (heads, [k_hd | v_hd]).
    wkv_r = wkv.astype(f32).reshape(data_width, heads, 2, head_dim)
    wk = wkv_r[:, :, 0, :].reshape(data_width, width).astype(jnp.bfloat16)
    wv = wkv_r[:, :, 1, :].reshape(data_width, width).astype(jnp.bfloat16)
    bkv_r = bkv.reshape(heads, 2, head_dim).astype(f32)
    bk = bkv_r[:, 0, :].reshape(1, width)
    bv = bkv_r[:, 1, :].reshape(1, width)
    wp_b = wp.astype(jnp.bfloat16)
    bp_b = bp.reshape(1, width).astype(f32)

    # ---- Padding for grid / (8,128) tiling alignment. ----
    bb = min(batch_block, B)
    b_pad = bb * pl.cdiv(B, bb)
    tq = min(q_block, _round_up(n_ctx, 8))
    nq_pad = tq * pl.cdiv(n_ctx, tq)
    nd_pad = _round_up(n_data, 8)
    mask_keys = nd_pad != n_data

    if (b_pad, nq_pad) != (B, n_ctx):
        x = jnp.pad(x, ((0, b_pad - B), (0, nq_pad - n_ctx), (0, 0)))
    if (b_pad, nd_pad) != (B, n_data):
        data = jnp.pad(data, ((0, b_pad - B), (0, nd_pad - n_data), (0, 0)))

    kernel = functools.partial(_mhca_kernel, heads=heads, head_dim=head_dim,
                               bb=bb, n_data_valid=n_data, mask_keys=mask_keys)

    grid = (b_pad // bb, nq_pad // tq)
    out = pl.pallas_call(
        kernel,
        out_shape=jax.ShapeDtypeStruct((b_pad, nq_pad, width), x.dtype),
        grid=grid,
        in_specs=[
            pl.BlockSpec((bb, tq, width), lambda b, qi: (b, qi, 0)),          # x
            pl.BlockSpec((bb, nd_pad, data_width), lambda b, qi: (b, 0, 0)),  # data
            pl.BlockSpec((width, width), lambda b, qi: (0, 0)),               # Wq*scale
            pl.BlockSpec((1, width), lambda b, qi: (0, 0)),                   # bq*scale
            pl.BlockSpec((data_width, width), lambda b, qi: (0, 0)),          # Wk
            pl.BlockSpec((1, width), lambda b, qi: (0, 0)),                   # bk
            pl.BlockSpec((data_width, width), lambda b, qi: (0, 0)),          # Wv
            pl.BlockSpec((1, width), lambda b, qi: (0, 0)),                   # bv
            pl.BlockSpec((width, width), lambda b, qi: (0, 0)),               # Wp
            pl.BlockSpec((1, width), lambda b, qi: (0, 0)),                   # bp
        ],
        out_specs=pl.BlockSpec((bb, tq, width), lambda b, qi: (b, qi, 0)),
        scratch_shapes=[pltpu.VMEM((bb * tq, width), jnp.float32)],
        compiler_params=pltpu.CompilerParams(
            dimension_semantics=("parallel", "parallel"),
            # 48 MiB is safe on every generation (v7x physical VMEM is 64 MiB/TC).
            vmem_limit_bytes=48 * 1024 * 1024,
        ),
    )(x, data, wq_s, bq_s, wk, bk, wv, bv, wp_b, bp_b)

    return out[:B, :n_ctx, :]


def _reference(x, data, wq, bq, wkv, bkv, wp, bp, *, heads):
    """Pure-JAX mirror of the PyTorch forward (weights stored as (in, out))."""
    B, n_ctx, width = x.shape
    _, n_data, _ = data.shape
    hd = width // heads

    q = x @ wq + bq
    kv = data @ wkv + bkv

    q = q.reshape(B, n_ctx, heads, hd)
    kv = kv.reshape(B, n_data, heads, 2 * hd)
    k, v = kv[..., :hd], kv[..., hd:]          # torch.split(kv, hd, dim=-1)

    q = jnp.swapaxes(q, 1, 2)                  # (B, h, n_ctx, hd)
    k = jnp.swapaxes(k, 1, 2)
    v = jnp.swapaxes(v, 1, 2)

    s = jnp.einsum("bhqd,bhkd->bhqk", q, k) / np.sqrt(hd)
    p = jax.nn.softmax(s, axis=-1)
    o = jnp.einsum("bhqk,bhkd->bhqd", p, v)
    o = jnp.swapaxes(o, 1, 2).reshape(B, n_ctx, width)
    return o @ wp + bp


def _run_case(key, *, B, n_ctx, n_data, width, data_width, heads):
    keys = jax.random.split(key, 8)
    x = jax.random.normal(keys[0], (B, n_ctx, width), dtype=jnp.float32)
    data = jax.random.normal(keys[1], (B, n_data, data_width), dtype=jnp.float32)

    w = 0.05
    wq = w * jax.random.normal(keys[2], (width, width), dtype=jnp.float32)
    bq = w * jax.random.normal(keys[3], (width,), dtype=jnp.float32)
    wkv = w * jax.random.normal(keys[4], (data_width, 2 * width), dtype=jnp.float32)
    bkv = w * jax.random.normal(keys[5], (2 * width,), dtype=jnp.float32)
    wp = w * jax.random.normal(keys[6], (width, width), dtype=jnp.float32)
    bp = w * jax.random.normal(keys[7], (width,), dtype=jnp.float32)

    out = multihead_cross_attention(x, data, wq, bq, wkv, bkv, wp, bp, heads=heads)
    out = jax.block_until_ready(out)

    ref = _reference(x, data, wq, bq, wkv, bkv, wp, bp, heads=heads)
    # Tolerance absorbs bf16 MXU operands vs. default-precision f32 reference.
    np.testing.assert_allclose(np.asarray(out), np.asarray(ref), rtol=2e-2, atol=2e-2)


if __name__ == "__main__":
    root = jax.random.PRNGKey(0)

    # Aligned case (matches the module's typical layout).
    _run_case(jax.random.fold_in(root, 0),
              B=2, n_ctx=16, n_data=32, width=128, data_width=128, heads=4)

    # Ragged case: exercises batch padding, n_ctx padding and the key mask,
    # plus data_width != width.
    _run_case(jax.random.fold_in(root, 1),
              B=3, n_ctx=12, n_data=36, width=128, data_width=256, heads=4)

    print("KERNEL_OK")
</pallas_src>

<mosaic_0001>
module attributes {stable_mosaic.version = 11 : i64} {
  func.func @_mhca_kernel(%arg0: i32, %arg1: i32, %arg2: memref<2x16x128xf32, #tpu.memory_space<vmem>>, %arg3: memref<2x32x128xf32, #tpu.memory_space<vmem>>, %arg4: memref<128x128xbf16, #tpu.memory_space<vmem>>, %arg5: memref<1x128xf32, #tpu.memory_space<vmem>>, %arg6: memref<128x128xbf16, #tpu.memory_space<vmem>>, %arg7: memref<1x128xf32, #tpu.memory_space<vmem>>, %arg8: memref<128x128xbf16, #tpu.memory_space<vmem>>, %arg9: memref<1x128xf32, #tpu.memory_space<vmem>>, %arg10: memref<128x128xbf16, #tpu.memory_space<vmem>>, %arg11: memref<1x128xf32, #tpu.memory_space<vmem>>, %arg12: memref<2x16x128xf32, #tpu.memory_space<vmem>>, %arg13: memref<32x128xf32, #tpu.memory_space<vmem>>) attributes {dimension_semantics = [#tpu.dimension_semantics<parallel>, #tpu.dimension_semantics<parallel>], iteration_bounds = array<i64: 1, 1>, scalar_prefetch = 0 : i64, scratch_operands = 1 : i64, tpu.core_type = #tpu.core_type<tc>, window_params = [{transform_indices = @transform_0, window_bounds = array<i64: 2, 16, 128>}, {transform_indices = @transform_1, window_bounds = array<i64: 2, 32, 128>}, {pipeline_mode = #tpu.pipeline_mode<synchronous>, transform_indices = @transform_2, window_bounds = array<i64: 128, 128>}, {pipeline_mode = #tpu.pipeline_mode<synchronous>, transform_indices = @transform_3, window_bounds = array<i64: 1, 128>}, {pipeline_mode = #tpu.pipeline_mode<synchronous>, transform_indices = @transform_4, window_bounds = array<i64: 128, 128>}, {pipeline_mode = #tpu.pipeline_mode<synchronous>, transform_indices = @transform_5, window_bounds = array<i64: 1, 128>}, {pipeline_mode = #tpu.pipeline_mode<synchronous>, transform_indices = @transform_6, window_bounds = array<i64: 128, 128>}, {pipeline_mode = #tpu.pipeline_mode<synchronous>, transform_indices = @transform_7, window_bounds = array<i64: 1, 128>}, {pipeline_mode = #tpu.pipeline_mode<synchronous>, transform_indices = @transform_8, window_bounds = array<i64: 128, 128>}, {pipeline_mode = #tpu.pipeline_mode<synchronous>, transform_indices = @transform_9, window_bounds = array<i64: 1, 128>}, {transform_indices = @transform_10, window_bounds = array<i64: 2, 16, 128>}]} {
    %c0 = arith.constant 0 : index
    %c0_0 = arith.constant 0 : index
    %c0_1 = arith.constant 0 : index
    %0 = vector.load %arg2[%c0, %c0_0, %c0_1] : memref<2x16x128xf32, #tpu.memory_space<vmem>>, vector<2x16x128xf32>
    %1 = vector.shape_cast %0 : vector<2x16x128xf32> to vector<32x128xf32>
    %2 = arith.truncf %1 : vector<32x128xf32> to vector<32x128xbf16>
    %c0_2 = arith.constant 0 : index
    %c0_3 = arith.constant 0 : index
    %c0_4 = arith.constant 0 : index
    %3 = vector.load %arg3[%c0_2, %c0_3, %c0_4] : memref<2x32x128xf32, #tpu.memory_space<vmem>>, vector<2x32x128xf32>
    %4 = vector.shape_cast %3 : vector<2x32x128xf32> to vector<64x128xf32>
    %5 = arith.truncf %4 : vector<64x128xf32> to vector<64x128xbf16>
    %c0_5 = arith.constant 0 : index
    %c0_6 = arith.constant 0 : index
    %6 = vector.load %arg4[%c0_5, %c0_6] : memref<128x128xbf16, #tpu.memory_space<vmem>>, vector<128x128xbf16>
    %cst = arith.constant dense<0.000000e+00> : vector<32x128xf32>
    %7 = tpu.matmul %2, %6, %cst {dimension_numbers = #tpu.dot_dimension_numbers<[1], [0], [0], [1], [0, 0, 1, 1], [], []>} : vector<32x128xbf16>, vector<128x128xbf16>, vector<32x128xf32> -> vector<32x128xf32>
    %c0_7 = arith.constant 0 : index
    %c0_8 = arith.constant 0 : index
    %8 = vector.load %arg5[%c0_7, %c0_8] : memref<1x128xf32, #tpu.memory_space<vmem>>, vector<1x128xf32>
    %9 = vector.broadcast %8 : vector<1x128xf32> to vector<32x128xf32>
    %10 = arith.addf %7, %9 : vector<32x128xf32>
    %11 = arith.truncf %10 : vector<32x128xf32> to vector<32x128xbf16>
    %c0_9 = arith.constant 0 : index
    %c0_10 = arith.constant 0 : index
    %12 = vector.load %arg6[%c0_9, %c0_10] : memref<128x128xbf16, #tpu.memory_space<vmem>>, vector<128x128xbf16>
    %cst_11 = arith.constant dense<0.000000e+00> : vector<64x128xf32>
    %13 = tpu.matmul %5, %12, %cst_11 {dimension_numbers = #tpu.dot_dimension_numbers<[1], [0], [0], [1], [0, 0, 1, 1], [], []>} : vector<64x128xbf16>, vector<128x128xbf16>, vector<64x128xf32> -> vector<64x128xf32>
    %c0_12 = arith.constant 0 : index
    %c0_13 = arith.constant 0 : index
    %14 = vector.load %arg7[%c0_12, %c0_13] : memref<1x128xf32, #tpu.memory_space<vmem>>, vector<1x128xf32>
    %15 = vector.broadcast %14 : vector<1x128xf32> to vector<64x128xf32>
    %16 = arith.addf %13, %15 : vector<64x128xf32>
    %17 = arith.truncf %16 : vector<64x128xf32> to vector<64x128xbf16>
    %c0_14 = arith.constant 0 : index
    %c0_15 = arith.constant 0 : index
    %18 = vector.load %arg8[%c0_14, %c0_15] : memref<128x128xbf16, #tpu.memory_space<vmem>>, vector<128x128xbf16>
    %cst_16 = arith.constant dense<0.000000e+00> : vector<64x128xf32>
    %19 = tpu.matmul %5, %18, %cst_16 {dimension_numbers = #tpu.dot_dimension_numbers<[1], [0], [0], [1], [0, 0, 1, 1], [], []>} : vector<64x128xbf16>, vector<128x128xbf16>, vector<64x128xf32> -> vector<64x128xf32>
    %c0_17 = arith.constant 0 : index
    %c0_18 = arith.constant 0 : index
    %20 = vector.load %arg9[%c0_17, %c0_18] : memref<1x128xf32, #tpu.memory_space<vmem>>, vector<1x128xf32>
    %21 = vector.broadcast %20 : vector<1x128xf32> to vector<64x128xf32>
    %22 = arith.addf %19, %21 : vector<64x128xf32>
    %23 = arith.truncf %22 : vector<64x128xf32> to vector<64x128xbf16>
    %24 = vector.extract_strided_slice %11 {offsets = [0, 0], sizes = [16, 128], strides = [1, 1]} : vector<32x128xbf16> to vector<16x128xbf16>
    %25 = vector.extract_strided_slice %17 {offsets = [0, 0], sizes = [32, 128], strides = [1, 1]} : vector<64x128xbf16> to vector<32x128xbf16>
    %26 = vector.extract_strided_slice %23 {offsets = [0, 0], sizes = [32, 128], strides = [1, 1]} : vector<64x128xbf16> to vector<32x128xbf16>
    %27 = vector.extract_strided_slice %24 {offsets = [0, 0], sizes = [16, 32], strides = [1, 1]} : vector<16x128xbf16> to vector<16x32xbf16>
    %28 = vector.extract_strided_slice %25 {offsets = [0, 0], sizes = [32, 32], strides = [1, 1]} : vector<32x128xbf16> to vector<32x32xbf16>
    %29 = vector.extract_strided_slice %26 {offsets = [0, 0], sizes = [32, 32], strides = [1, 1]} : vector<32x128xbf16> to vector<32x32xbf16>
    %cst_19 = arith.constant dense<0.000000e+00> : vector<16x32xf32>
    %30 = tpu.matmul %27, %28, %cst_19 {dimension_numbers = #tpu.dot_dimension_numbers<[1], [1], [0], [0], [0, 0, 1, 0], [], []>} : vector<16x32xbf16>, vector<32x32xbf16>, vector<16x32xf32> -> vector<16x32xf32>
    %cst_20 = arith.constant dense<0xFF800000> : vector<16xf32>
    %31 = vector.multi_reduction <maximumf>, %30, %cst_20 [1] : vector<16x32xf32> to vector<16xf32>
    %32 = vector.shape_cast %31 : vector<16xf32> to vector<16x1xf32>
    %33 = vector.broadcast %32 : vector<16x1xf32> to vector<16x32xf32>
    %34 = arith.subf %30, %33 : vector<16x32xf32>
    %35 = math.exp %34 : vector<16x32xf32>
    %cst_21 = arith.constant dense<0.000000e+00> : vector<16xf32>
    %36 = vector.multi_reduction <add>, %35, %cst_21 [1] : vector<16x32xf32> to vector<16xf32>
    %37 = vector.shape_cast %36 : vector<16xf32> to vector<16x1xf32>
    %38 = tpu.reciprocal %37 {approx = true} : vector<16x1xf32> -> vector<16x1xf32>
    %39 = vector.broadcast %38 : vector<16x1xf32> to vector<16x32xf32>
    %40 = arith.mulf %35, %39 : vector<16x32xf32>
    %41 = arith.truncf %40 : vector<16x32xf32> to vector<16x32xbf16>
    %cst_22 = arith.constant dense<0.000000e+00> : vector<16x32xf32>
    %42 = tpu.matmul %41, %29, %cst_22 {dimension_numbers = #tpu.dot_dimension_numbers<[1], [0], [0], [1], [0, 0, 1, 1], [], []>} : vector<16x32xbf16>, vector<32x32xbf16>, vector<16x32xf32> -> vector<16x32xf32>
    %c0_23 = arith.constant 0 : index
    %c0_24 = arith.constant 0 : index
    %43 = vector.load %arg13[%c0_23, %c0_24] : memref<32x128xf32, #tpu.memory_space<vmem>>, vector<16x32xf32>
    tpu.vector_store %arg13[%c0_23, %c0_24], %42 {strides = array<i32>} : memref<32x128xf32, #tpu.memory_space<vmem>>, vector<16x32xf32>,
    %44 = vector.extract_strided_slice %24 {offsets = [0, 32], sizes = [16, 32], strides = [1, 1]} : vector<16x128xbf16> to vector<16x32xbf16>
    %45 = vector.extract_strided_slice %25 {offsets = [0, 32], sizes = [32, 32], strides = [1, 1]} : vector<32x128xbf16> to vector<32x32xbf16>
    %46 = vector.extract_strided_slice %26 {offsets = [0, 32], sizes = [32, 32], strides = [1, 1]} : vector<32x128xbf16> to vector<32x32xbf16>
    %cst_25 = arith.constant dense<0.000000e+00> : vector<16x32xf32>
    %47 = tpu.matmul %44, %45, %cst_25 {dimension_numbers = #tpu.dot_dimension_numbers<[1], [1], [0], [0], [0, 0, 1, 0], [], []>} : vector<16x32xbf16>, vector<32x32xbf16>, vector<16x32xf32> -> vector<16x32xf32>
    %cst_26 = arith.constant dense<0xFF800000> : vector<16xf32>
    %48 = vector.multi_reduction <maximumf>, %47, %cst_26 [1] : vector<16x32xf32> to vector<16xf32>
    %49 = vector.shape_cast %48 : vector<16xf32> to vector<16x1xf32>
    %50 = vector.broadcast %49 : vector<16x1xf32> to vector<16x32xf32>
    %51 = arith.subf %47, %50 : vector<16x32xf32>
    %52 = math.exp %51 : vector<16x32xf32>
    %cst_27 = arith.constant dense<0.000000e+00> : vector<16xf32>
    %53 = vector.multi_reduction <add>, %52, %cst_27 [1] : vector<16x32xf32> to vector<16xf32>
    %54 = vector.shape_cast %53 : vector<16xf32> to vector<16x1xf32>
    %55 = tpu.reciprocal %54 {approx = true} : vector<16x1xf32> -> vector<16x1xf32>
    %56 = vector.broadcast %55 : vector<16x1xf32> to vector<16x32xf32>
    %57 = arith.mulf %52, %56 : vector<16x32xf32>
    %58 = arith.truncf %57 : vector<16x32xf32> to vector<16x32xbf16>
    %cst_28 = arith.constant dense<0.000000e+00> : vector<16x32xf32>
    %59 = tpu.matmul %58, %46, %cst_28 {dimension_numbers = #tpu.dot_dimension_numbers<[1], [0], [0], [1], [0, 0, 1, 1], [], []>} : vector<16x32xbf16>, vector<32x32xbf16>, vector<16x32xf32> -> vector<16x32xf32>
    %c0_29 = arith.constant 0 : index
    %c32 = arith.constant 32 : index
    %60 = vector.load %arg13[%c0_29, %c32] : memref<32x128xf32, #tpu.memory_space<vmem>>, vector<16x32xf32>
    tpu.vector_store %arg13[%c0_29, %c32], %59 {strides = array<i32>} : memref<32x128xf32, #tpu.memory_space<vmem>>, vector<16x32xf32>,
    %61 = vector.extract_strided_slice %24 {offsets = [0, 64], sizes = [16, 32], strides = [1, 1]} : vector<16x128xbf16> to vector<16x32xbf16>
    %62 = vector.extract_strided_slice %25 {offsets = [0, 64], sizes = [32, 32], strides = [1, 1]} : vector<32x128xbf16> to vector<32x32xbf16>
    %63 = vector.extract_strided_slice %26 {offsets = [0, 64], sizes = [32, 32], strides = [1, 1]} : vector<32x128xbf16> to vector<32x32xbf16>
    %cst_30 = arith.constant dense<0.000000e+00> : vector<16x32xf32>
    %64 = tpu.matmul %61, %62, %cst_30 {dimension_numbers = #tpu.dot_dimension_numbers<[1], [1], [0], [0], [0, 0, 1, 0], [], []>} : vector<16x32xbf16>, vector<32x32xbf16>, vector<16x32xf32> -> vector<16x32xf32>
    %cst_31 = arith.constant dense<0xFF800000> : vector<16xf32>
    %65 = vector.multi_reduction <maximumf>, %64, %cst_31 [1] : vector<16x32xf32> to vector<16xf32>
    %66 = vector.shape_cast %65 : vector<16xf32> to vector<16x1xf32>
    %67 = vector.broadcast %66 : vector<16x1xf32> to vector<16x32xf32>
    %68 = arith.subf %64, %67 : vector<16x32xf32>
    %69 = math.exp %68 : vector<16x32xf32>
    %cst_32 = arith.constant dense<0.000000e+00> : vector<16xf32>
    %70 = vector.multi_reduction <add>, %69, %cst_32 [1] : vector<16x32xf32> to vector<16xf32>
    %71 = vector.shape_cast %70 : vector<16xf32> to vector<16x1xf32>
    %72 = tpu.reciprocal %71 {approx = true} : vector<16x1xf32> -> vector<16x1xf32>
    %73 = vector.broadcast %72 : vector<16x1xf32> to vector<16x32xf32>
    %74 = arith.mulf %69, %73 : vector<16x32xf32>
    %75 = arith.truncf %74 : vector<16x32xf32> to vector<16x32xbf16>
    %cst_33 = arith.constant dense<0.000000e+00> : vector<16x32xf32>
    %76 = tpu.matmul %75, %63, %cst_33 {dimension_numbers = #tpu.dot_dimension_numbers<[1], [0], [0], [1], [0, 0, 1, 1], [], []>} : vector<16x32xbf16>, vector<32x32xbf16>, vector<16x32xf32> -> vector<16x32xf32>
    %c0_34 = arith.constant 0 : index
    %c64 = arith.constant 64 : index
    %77 = vector.load %arg13[%c0_34, %c64] : memref<32x128xf32, #tpu.memory_space<vmem>>, vector<16x32xf32>
    tpu.vector_store %arg13[%c0_34, %c64], %76 {strides = array<i32>} : memref<32x128xf32, #tpu.memory_space<vmem>>, vector<16x32xf32>,
    %78 = vector.extract_strided_slice %24 {offsets = [0, 96], sizes = [16, 32], strides = [1, 1]} : vector<16x128xbf16> to vector<16x32xbf16>
    %79 = vector.extract_strided_slice %25 {offsets = [0, 96], sizes = [32, 32], strides = [1, 1]} : vector<32x128xbf16> to vector<32x32xbf16>
    %80 = vector.extract_strided_slice %26 {offsets = [0, 96], sizes = [32, 32], strides = [1, 1]} : vector<32x128xbf16> to vector<32x32xbf16>
    %cst_35 = arith.constant dense<0.000000e+00> : vector<16x32xf32>
    %81 = tpu.matmul %78, %79, %cst_35 {dimension_numbers = #tpu.dot_dimension_numbers<[1], [1], [0], [0], [0, 0, 1, 0], [], []>} : vector<16x32xbf16>, vector<32x32xbf16>, vector<16x32xf32> -> vector<16x32xf32>
    %cst_36 = arith.constant dense<0xFF800000> : vector<16xf32>
    %82 = vector.multi_reduction <maximumf>, %81, %cst_36 [1] : vector<16x32xf32> to vector<16xf32>
    %83 = vector.shape_cast %82 : vector<16xf32> to vector<16x1xf32>
    %84 = vector.broadcast %83 : vector<16x1xf32> to vector<16x32xf32>
    %85 = arith.subf %81, %84 : vector<16x32xf32>
    %86 = math.exp %85 : vector<16x32xf32>
    %cst_37 = arith.constant dense<0.000000e+00> : vector<16xf32>
    %87 = vector.multi_reduction <add>, %86, %cst_37 [1] : vector<16x32xf32> to vector<16xf32>
    %88 = vector.shape_cast %87 : vector<16xf32> to vector<16x1xf32>
    %89 = tpu.reciprocal %88 {approx = true} : vector<16x1xf32> -> vector<16x1xf32>
    %90 = vector.broadcast %89 : vector<16x1xf32> to vector<16x32xf32>
    %91 = arith.mulf %86, %90 : vector<16x32xf32>
    %92 = arith.truncf %91 : vector<16x32xf32> to vector<16x32xbf16>
    %cst_38 = arith.constant dense<0.000000e+00> : vector<16x32xf32>
    %93 = tpu.matmul %92, %80, %cst_38 {dimension_numbers = #tpu.dot_dimension_numbers<[1], [0], [0], [1], [0, 0, 1, 1], [], []>} : vector<16x32xbf16>, vector<32x32xbf16>, vector<16x32xf32> -> vector<16x32xf32>
    %c0_39 = arith.constant 0 : index
    %c96 = arith.constant 96 : index
    %94 = vector.load %arg13[%c0_39, %c96] : memref<32x128xf32, #tpu.memory_space<vmem>>, vector<16x32xf32>
    tpu.vector_store %arg13[%c0_39, %c96], %93 {strides = array<i32>} : memref<32x128xf32, #tpu.memory_space<vmem>>, vector<16x32xf32>,
    %95 = vector.extract_strided_slice %11 {offsets = [16, 0], sizes = [16, 128], strides = [1, 1]} : vector<32x128xbf16> to vector<16x128xbf16>
    %96 = vector.extract_strided_slice %17 {offsets = [32, 0], sizes = [32, 128], strides = [1, 1]} : vector<64x128xbf16> to vector<32x128xbf16>
    %97 = vector.extract_strided_slice %23 {offsets = [32, 0], sizes = [32, 128], strides = [1, 1]} : vector<64x128xbf16> to vector<32x128xbf16>
    %98 = vector.extract_strided_slice %95 {offsets = [0, 0], sizes = [16, 32], strides = [1, 1]} : vector<16x128xbf16> to vector<16x32xbf16>
    %99 = vector.extract_strided_slice %96 {offsets = [0, 0], sizes = [32, 32], strides = [1, 1]} : vector<32x128xbf16> to vector<32x32xbf16>
    %100 = vector.extract_strided_slice %97 {offsets = [0, 0], sizes = [32, 32], strides = [1, 1]} : vector<32x128xbf16> to vector<32x32xbf16>
    %cst_40 = arith.constant dense<0.000000e+00> : vector<16x32xf32>
    %101 = tpu.matmul %98, %99, %cst_40 {dimension_numbers = #tpu.dot_dimension_numbers<[1], [1], [0], [0], [0, 0, 1, 0], [], []>} : vector<16x32xbf16>, vector<32x32xbf16>, vector<16x32xf32> -> vector<16x32xf32>
    %cst_41 = arith.constant dense<0xFF800000> : vector<16xf32>
    %102 = vector.multi_reduction <maximumf>, %101, %cst_41 [1] : vector<16x32xf32> to vector<16xf32>
    %103 = vector.shape_cast %102 : vector<16xf32> to vector<16x1xf32>
    %104 = vector.broadcast %103 : vector<16x1xf32> to vector<16x32xf32>
    %105 = arith.subf %101, %104 : vector<16x32xf32>
    %106 = math.exp %105 : vector<16x32xf32>
    %cst_42 = arith.constant dense<0.000000e+00> : vector<16xf32>
    %107 = vector.multi_reduction <add>, %106, %cst_42 [1] : vector<16x32xf32> to vector<16xf32>
    %108 = vector.shape_cast %107 : vector<16xf32> to vector<16x1xf32>
    %109 = tpu.reciprocal %108 {approx = true} : vector<16x1xf32> -> vector<16x1xf32>
    %110 = vector.broadcast %109 : vector<16x1xf32> to vector<16x32xf32>
    %111 = arith.mulf %106, %110 : vector<16x32xf32>
    %112 = arith.truncf %111 : vector<16x32xf32> to vector<16x32xbf16>
    %cst_43 = arith.constant dense<0.000000e+00> : vector<16x32xf32>
    %113 = tpu.matmul %112, %100, %cst_43 {dimension_numbers = #tpu.dot_dimension_numbers<[1], [0], [0], [1], [0, 0, 1, 1], [], []>} : vector<16x32xbf16>, vector<32x32xbf16>, vector<16x32xf32> -> vector<16x32xf32>
    %c16 = arith.constant 16 : index
    %c0_44 = arith.constant 0 : index
    %114 = vector.load %arg13[%c16, %c0_44] : memref<32x128xf32, #tpu.memory_space<vmem>>, vector<16x32xf32>
    tpu.vector_store %arg13[%c16, %c0_44], %113 {strides = array<i32>} : memref<32x128xf32, #tpu.memory_space<vmem>>, vector<16x32xf32>,
    %115 = vector.extract_strided_slice %95 {offsets = [0, 32], sizes = [16, 32], strides = [1, 1]} : vector<16x128xbf16> to vector<16x32xbf16>
    %116 = vector.extract_strided_slice %96 {offsets = [0, 32], sizes = [32, 32], strides = [1, 1]} : vector<32x128xbf16> to vector<32x32xbf16>
    %117 = vector.extract_strided_slice %97 {offsets = [0, 32], sizes = [32, 32], strides = [1, 1]} : vector<32x128xbf16> to vector<32x32xbf16>
    %cst_45 = arith.constant dense<0.000000e+00> : vector<16x32xf32>
    %118 = tpu.matmul %115, %116, %cst_45 {dimension_numbers = #tpu.dot_dimension_numbers<[1], [1], [0], [0], [0, 0, 1, 0], [], []>} : vector<16x32xbf16>, vector<32x32xbf16>, vector<16x32xf32> -> vector<16x32xf32>
    %cst_46 = arith.constant dense<0xFF800000> : vector<16xf32>
    %119 = vector.multi_reduction <maximumf>, %118, %cst_46 [1] : vector<16x32xf32> to vector<16xf32>
    %120 = vector.shape_cast %119 : vector<16xf32> to vector<16x1xf32>
    %121 = vector.broadcast %120 : vector<16x1xf32> to vector<16x32xf32>
    %122 = arith.subf %118, %121 : vector<16x32xf32>
    %123 = math.exp %122 : vector<16x32xf32>
    %cst_47 = arith.constant dense<0.000000e+00> : vector<16xf32>
    %124 = vector.multi_reduction <add>, %123, %cst_47 [1] : vector<16x32xf32> to vector<16xf32>
    %125 = vector.shape_cast %124 : vector<16xf32> to vector<16x1xf32>
    %126 = tpu.reciprocal %125 {approx = true} : vector<16x1xf32> -> vector<16x1xf32>
    %127 = vector.broadcast %126 : vector<16x1xf32> to vector<16x32xf32>
    %128 = arith.mulf %123, %127 : vector<16x32xf32>
    %129 = arith.truncf %128 : vector<16x32xf32> to vector<16x32xbf16>
    %cst_48 = arith.constant dense<0.000000e+00> : vector<16x32xf32>
    %130 = tpu.matmul %129, %117, %cst_48 {dimension_numbers = #tpu.dot_dimension_numbers<[1], [0], [0], [1], [0, 0, 1, 1], [], []>} : vector<16x32xbf16>, vector<32x32xbf16>, vector<16x32xf32> -> vector<16x32xf32>
    %c16_49 = arith.constant 16 : index
    %c32_50 = arith.constant 32 : index
    %131 = vector.load %arg13[%c16_49, %c32_50] : memref<32x128xf32, #tpu.memory_space<vmem>>, vector<16x32xf32>
    tpu.vector_store %arg13[%c16_49, %c32_50], %130 {strides = array<i32>} : memref<32x128xf32, #tpu.memory_space<vmem>>, vector<16x32xf32>,
    %132 = vector.extract_strided_slice %95 {offsets = [0, 64], sizes = [16, 32], strides = [1, 1]} : vector<16x128xbf16> to vector<16x32xbf16>
    %133 = vector.extract_strided_slice %96 {offsets = [0, 64], sizes = [32, 32], strides = [1, 1]} : vector<32x128xbf16> to vector<32x32xbf16>
    %134 = vector.extract_strided_slice %97 {offsets = [0, 64], sizes = [32, 32], strides = [1, 1]} : vector<32x128xbf16> to vector<32x32xbf16>
    %cst_51 = arith.constant dense<0.000000e+00> : vector<16x32xf32>
    %135 = tpu.matmul %132, %133, %cst_51 {dimension_numbers = #tpu.dot_dimension_numbers<[1], [1], [0], [0], [0, 0, 1, 0], [], []>} : vector<16x32xbf16>, vector<32x32xbf16>, vector<16x32xf32> -> vector<16x32xf32>
    %cst_52 = arith.constant dense<0xFF800000> : vector<16xf32>
    %136 = vector.multi_reduction <maximumf>, %135, %cst_52 [1] : vector<16x32xf32> to vector<16xf32>
    %137 = vector.shape_cast %136 : vector<16xf32> to vector<16x1xf32>
    %138 = vector.broadcast %137 : vector<16x1xf32> to vector<16x32xf32>
    %139 = arith.subf %135, %138 : vector<16x32xf32>
    %140 = math.exp %139 : vector<16x32xf32>
    %cst_53 = arith.constant dense<0.000000e+00> : vector<16xf32>
    %141 = vector.multi_reduction <add>, %140, %cst_53 [1] : vector<16x32xf32> to vector<16xf32>
    %142 = vector.shape_cast %141 : vector<16xf32> to vector<16x1xf32>
    %143 = tpu.reciprocal %142 {approx = true} : vector<16x1xf32> -> vector<16x1xf32>
    %144 = vector.broadcast %143 : vector<16x1xf32> to vector<16x32xf32>
    %145 = arith.mulf %140, %144 : vector<16x32xf32>
    %146 = arith.truncf %145 : vector<16x32xf32> to vector<16x32xbf16>
    %cst_54 = arith.constant dense<0.000000e+00> : vector<16x32xf32>
    %147 = tpu.matmul %146, %134, %cst_54 {dimension_numbers = #tpu.dot_dimension_numbers<[1], [0], [0], [1], [0, 0, 1, 1], [], []>} : vector<16x32xbf16>, vector<32x32xbf16>, vector<16x32xf32> -> vector<16x32xf32>
    %c16_55 = arith.constant 16 : index
    %c64_56 = arith.constant 64 : index
    %148 = vector.load %arg13[%c16_55, %c64_56] : memref<32x128xf32, #tpu.memory_space<vmem>>, vector<16x32xf32>
    tpu.vector_store %arg13[%c16_55, %c64_56], %147 {strides = array<i32>} : memref<32x128xf32, #tpu.memory_space<vmem>>, vector<16x32xf32>,
    %149 = vector.extract_strided_slice %95 {offsets = [0, 96], sizes = [16, 32], strides = [1, 1]} : vector<16x128xbf16> to vector<16x32xbf16>
    %150 = vector.extract_strided_slice %96 {offsets = [0, 96], sizes = [32, 32], strides = [1, 1]} : vector<32x128xbf16> to vector<32x32xbf16>
    %151 = vector.extract_strided_slice %97 {offsets = [0, 96], sizes = [32, 32], strides = [1, 1]} : vector<32x128xbf16> to vector<32x32xbf16>
    %cst_57 = arith.constant dense<0.000000e+00> : vector<16x32xf32>
    %152 = tpu.matmul %149, %150, %cst_57 {dimension_numbers = #tpu.dot_dimension_numbers<[1], [1], [0], [0], [0, 0, 1, 0], [], []>} : vector<16x32xbf16>, vector<32x32xbf16>, vector<16x32xf32> -> vector<16x32xf32>
    %cst_58 = arith.constant dense<0xFF800000> : vector<16xf32>
    %153 = vector.multi_reduction <maximumf>, %152, %cst_58 [1] : vector<16x32xf32> to vector<16xf32>
    %154 = vector.shape_cast %153 : vector<16xf32> to vector<16x1xf32>
    %155 = vector.broadcast %154 : vector<16x1xf32> to vector<16x32xf32>
    %156 = arith.subf %152, %155 : vector<16x32xf32>
    %157 = math.exp %156 : vector<16x32xf32>
    %cst_59 = arith.constant dense<0.000000e+00> : vector<16xf32>
    %158 = vector.multi_reduction <add>, %157, %cst_59 [1] : vector<16x32xf32> to vector<16xf32>
    %159 = vector.shape_cast %158 : vector<16xf32> to vector<16x1xf32>
    %160 = tpu.reciprocal %159 {approx = true} : vector<16x1xf32> -> vector<16x1xf32>
    %161 = vector.broadcast %160 : vector<16x1xf32> to vector<16x32xf32>
    %162 = arith.mulf %157, %161 : vector<16x32xf32>
    %163 = arith.truncf %162 : vector<16x32xf32> to vector<16x32xbf16>
    %cst_60 = arith.constant dense<0.000000e+00> : vector<16x32xf32>
    %164 = tpu.matmul %163, %151, %cst_60 {dimension_numbers = #tpu.dot_dimension_numbers<[1], [0], [0], [1], [0, 0, 1, 1], [], []>} : vector<16x32xbf16>, vector<32x32xbf16>, vector<16x32xf32> -> vector<16x32xf32>
    %c16_61 = arith.constant 16 : index
    %c96_62 = arith.constant 96 : index
    %165 = vector.load %arg13[%c16_61, %c96_62] : memref<32x128xf32, #tpu.memory_space<vmem>>, vector<16x32xf32>
    tpu.vector_store %arg13[%c16_61, %c96_62], %164 {strides = array<i32>} : memref<32x128xf32, #tpu.memory_space<vmem>>, vector<16x32xf32>,
    %c0_63 = arith.constant 0 : index
    %c0_64 = arith.constant 0 : index
    %166 = vector.load %arg13[%c0_63, %c0_64] : memref<32x128xf32, #tpu.memory_space<vmem>>, vector<32x128xf32>
    %167 = arith.truncf %166 : vector<32x128xf32> to vector<32x128xbf16>
    %c0_65 = arith.constant 0 : index
    %c0_66 = arith.constant 0 : index
    %168 = vector.load %arg10[%c0_65, %c0_66] : memref<128x128xbf16, #tpu.memory_space<vmem>>, vector<128x128xbf16>
    %cst_67 = arith.constant dense<0.000000e+00> : vector<32x128xf32>
    %169 = tpu.matmul %167, %168, %cst_67 {dimension_numbers = #tpu.dot_dimension_numbers<[1], [0], [0], [1], [0, 0, 1, 1], [], []>} : vector<32x128xbf16>, vector<128x128xbf16>, vector<32x128xf32> -> vector<32x128xf32>
    %c0_68 = arith.constant 0 : index
    %c0_69 = arith.constant 0 : index
    %170 = vector.load %arg11[%c0_68, %c0_69] : memref<1x128xf32, #tpu.memory_space<vmem>>, vector<1x128xf32>
    %171 = vector.broadcast %170 : vector<1x128xf32> to vector<32x128xf32>
    %172 = arith.addf %169, %171 : vector<32x128xf32>
    %173 = vector.shape_cast %172 : vector<32x128xf32> to vector<2x16x128xf32>
    %c0_70 = arith.constant 0 : index
    %c0_71 = arith.constant 0 : index
    %c0_72 = arith.constant 0 : index
    %174 = vector.load %arg12[%c0_70, %c0_71, %c0_72] : memref<2x16x128xf32, #tpu.memory_space<vmem>>, vector<2x16x128xf32>
    tpu.vector_store %arg12[%c0_70, %c0_71, %c0_72], %173 {strides = array<i32>} : memref<2x16x128xf32, #tpu.memory_space<vmem>>, vector<2x16x128xf32>,
    return
  }
  func.func @transform_0(%arg0: i32, %arg1: i32) -> (i32, i32, i32) {
    %c0_i32 = arith.constant 0 : i32
    %c0_i32_0 = arith.constant 0 : i32
    return %arg0, %arg1, %c0_i32 : i32, i32, i32
  }
  func.func @transform_1(%arg0: i32, %arg1: i32) -> (i32, i32, i32) {
    %c0_i32 = arith.constant 0 : i32
    %c0_i32_0 = arith.constant 0 : i32
    %c0_i32_1 = arith.constant 0 : i32
    return %arg0, %c0_i32, %c0_i32_0 : i32, i32, i32
  }
  func.func @transform_2(%arg0: i32, %arg1: i32) -> (i32, i32) {
    %c0_i32 = arith.constant 0 : i32
    %c0_i32_0 = arith.constant 0 : i32
    %c0_i32_1 = arith.constant 0 : i32
    return %c0_i32, %c0_i32_0 : i32, i32
  }
  func.func @transform_3(%arg0: i32, %arg1: i32) -> (i32, i32) {
    %c0_i32 = arith.constant 0 : i32
    %c0_i32_0 = arith.constant 0 : i32
    %c0_i32_1 = arith.constant 0 : i32
    return %c0_i32, %c0_i32_0 : i32, i32
  }
  func.func @transform_4(%arg0: i32, %arg1: i32) -> (i32, i32) {
    %c0_i32 = arith.constant 0 : i32
    %c0_i32_0 = arith.constant 0 : i32
    %c0_i32_1 = arith.constant 0 : i32
    return %c0_i32, %c0_i32_0 : i32, i32
  }
  func.func @transform_5(%arg0: i32, %arg1: i32) -> (i32, i32) {
    %c0_i32 = arith.constant 0 : i32
    %c0_i32_0 = arith.constant 0 : i32
    %c0_i32_1 = arith.constant 0 : i32
    return %c0_i32, %c0_i32_0 : i32, i32
  }
  func.func @transform_6(%arg0: i32, %arg1: i32) -> (i32, i32) {
    %c0_i32 = arith.constant 0 : i32
    %c0_i32_0 = arith.constant 0 : i32
    %c0_i32_1 = arith.constant 0 : i32
    return %c0_i32, %c0_i32_0 : i32, i32
  }
  func.func @transform_7(%arg0: i32, %arg1: i32) -> (i32, i32) {
    %c0_i32 = arith.constant 0 : i32
    %c0_i32_0 = arith.constant 0 : i32
    %c0_i32_1 = arith.constant 0 : i32
    return %c0_i32, %c0_i32_0 : i32, i32
  }
  func.func @transform_8(%arg0: i32, %arg1: i32) -> (i32, i32) {
    %c0_i32 = arith.constant 0 : i32
    %c0_i32_0 = arith.constant 0 : i32
    %c0_i32_1 = arith.constant 0 : i32
    return %c0_i32, %c0_i32_0 : i32, i32
  }
  func.func @transform_9(%arg0: i32, %arg1: i32) -> (i32, i32) {
    %c0_i32 = arith.constant 0 : i32
    %c0_i32_0 = arith.constant 0 : i32
    %c0_i32_1 = arith.constant 0 : i32
    return %c0_i32, %c0_i32_0 : i32, i32
  }
  func.func @transform_10(%arg0: i32, %arg1: i32) -> (i32, i32, i32) {
    %c0_i32 = arith.constant 0 : i32
    %c0_i32_0 = arith.constant 0 : i32
    return %arg0, %arg1, %c0_i32 : i32, i32, i32
  }
}

</mosaic_0001>

<bundles_post_ra>
// kernel: tpu_custom_call.1
= control target key start
LH: loop header
LB: loop body
LE: loop exit
PB: predicated region body
PF: predicated region fallthrough
CT: control target
= control target key end

     0   :  { %15 = vsyncpa [#allocation4], 0  ;;  %s2879_s0 = inlined_call_operand.hbm [shape: f32[2,16,128], index: 0, kind: input, shape index: {}]   ;;  %s2880_s1 = inlined_call_operand.hbm [shape: f32[2,32,128], index: 1, kind: input, shape index: {}]   ;;  %s2881_s2 = inlined_call_operand.hbm [shape: bf16[128,128], index: 2, kind: input, shape index: {}]   ;;  %s2882_s3 = inlined_call_operand.vmem [shape: f32[1,128], index: 3, kind: input, shape index: {}]   ;;  %s2883_s4 = inlined_call_operand.hbm [shape: bf16[128,128], index: 4, kind: input, shape index: {}]   ;;  %s2884_s5 = inlined_call_operand.vmem [shape: f32[1,128], index: 5, kind: input, shape index: {}]   ;;  %s2885_s6 = inlined_call_operand.hbm [shape: bf16[128,128], index: 6, kind: input, shape index: {}]   ;;  %s2886_s7 = inlined_call_operand.vmem [shape: f32[1,128], index: 7, kind: input, shape index: {}]   ;;  %s2887_s8 = inlined_call_operand.hbm [shape: bf16[128,128], index: 8, kind: input, shape index: {}]   ;;  %s2888_s9 = inlined_call_operand.vmem [shape: f32[1,128], index: 9, kind: input, shape index: {}]   ;;  %s2889_s10 = inlined_call_operand.hbm [shape: f32[2,16,128], index: 10, kind: output, shape index: {}]  }
   0x1   :  { %16 = vsyncpa [#allocation7], 0 }
   0x2   :  { %17 = vsyncpa [#allocation10], 0 }
   0x3   :  { %18 = vsyncpa [#allocation13], 0 }
   0x4   :  { %19 = vsyncpa [#allocation5], 0  ;;  %s2410_s13 = smov [#allocation6]   ;;  %s2246_s17 = scalar_lea.hbm %s2880_s1, 1024 }
   0x5   :  { %s37_s14 = sshll.u32 %s2410_s13, 4  ;;  %p2247_p0 = scmp.ne.s32.totalorder %s2880_s1, %s2246_s17  ;;  %s38_s14 = int_to_ptr.vmem [resolvable:$true] %s37_s14 }
   0x6   :  { %p2250_p1 = scmp.lt.u32.totalorder %s2246_s17, %s2880_s1 }
   0x8   :  { %p2252_p2 = pnand %p2250_p1, %p2247_p0 }
   0xa   :  { %2255 = shalt.err (!%p2252_p2)
}
   0xb   :  { %s2256_s22 = scalar_lea.vmem %s38_s14, 1024  ;;  %p2261_p4 = scmp.lt.s32.totalorder %s38_s14, %s38_s14 }
   0xc   :  { %p2257_p3 = scmp.ne.s32.totalorder %s38_s14, %s2256_s22  ;;  %p2262_p5 = scmp.lt.s32.totalorder %s2256_s22, %s2256_s22 }
   0xe   :  { %p2263_p6 = por %p2262_p5, %p2261_p4 }
  0x10   :  { %p2264_p7 = pnand %p2263_p6, %p2257_p3 }
  0x12   :  { %2267 = shalt.err (!%p2264_p7)
}
  0x13   :  { %s2411_s23 = smov 128   ;;  %s2412_s24 = smov 8  }
  0x14   :  { %43 = dma.hbm_to_vmem [thread:$0]  %s2880_s1, 1024, %s38_s14, [#allocation7], %s2411_s23, %s2411_s23, %s2412_s24  }
  0x15   :  { %s2413_s27 = smov [#allocation9]   ;;  %s2414_s29 = smov [#allocation3]  }
  0x16   :  { %s63_s28 = sshll.u32 %s2413_s27, 4  ;;  %s25_s30 = sshll.u32 %s2414_s29, 4  ;;  %s64_s28 = int_to_ptr.vmem [resolvable:$true] %s63_s28  ;;  %s26_s30 = int_to_ptr.vmem [resolvable:$true] %s25_s30 }
  0x17   :  { %s2268_s13 = scalar_lea.hbm %s2883_s4, 1024 }
  0x18   :  { %p2269_p8 = scmp.ne.s32.totalorder %s2883_s4, %s2268_s13  ;;  %p2272_p9 = scmp.lt.u32.totalorder %s2268_s13, %s2883_s4 }
  0x1a   :  { %p2274_p10 = pnand %p2272_p9, %p2269_p8 }
  0x1c   :  { %2277 = shalt.err (!%p2274_p10)
}
  0x1d   :  { %s2278_s1 = scalar_lea.vmem %s64_s28, 1024  ;;  %p2283_p12 = scmp.lt.s32.totalorder %s64_s28, %s64_s28 }
  0x1e   :  { %p2279_p11 = scmp.ne.s32.totalorder %s64_s28, %s2278_s1  ;;  %p2284_p13 = scmp.lt.s32.totalorder %s2278_s1, %s2278_s1 }
  0x20   :  { %p2285_p0 = por %p2284_p13, %p2283_p12 }
  0x22   :  { %p2286_p1 = pnand %p2285_p0, %p2279_p11 }
  0x24   :  { %2289 = shalt.err (!%p2286_p1)
}
  0x25   :  { %s2415_s14 = smov 64   ;;  %s2416_s19 = smov 4  }
  0x26   :  { %69 = dma.hbm_to_vmem [thread:$0]  %s2883_s4, 1024, %s64_s28, [#allocation10], %s2415_s14, %s2415_s14, %s2416_s19  }
  0x27   :  { %s2290_s26 = scalar_lea.hbm %s2879_s0, 512 }
  0x28   :  { %p2291_p2 = scmp.ne.s32.totalorder %s2879_s0, %s2290_s26  ;;  %p2294_p3 = scmp.lt.u32.totalorder %s2290_s26, %s2879_s0 }
  0x2a   :  { %p2296_p4 = pnand %p2294_p3, %p2291_p2 }
  0x2c   :  { %2299 = shalt.err (!%p2296_p4)
}
  0x2d   :  { %s2300_s13 = scalar_lea.vmem %s26_s30, 512  ;;  %p2305_p6 = scmp.lt.s32.totalorder %s26_s30, %s26_s30 }
  0x2e   :  { %p2301_p5 = scmp.ne.s32.totalorder %s26_s30, %s2300_s13  ;;  %p2306_p7 = scmp.lt.s32.totalorder %s2300_s13, %s2300_s13 }
  0x30   :  { %p2307_p8 = por %p2306_p7, %p2305_p6 }
  0x32   :  { %p2308_p9 = pnand %p2307_p8, %p2301_p5 }
  0x34   :  { %2311 = shalt.err (!%p2308_p9)
}
  0x35   :  { %31 = dma.hbm_to_vmem [thread:$0]  %s2879_s0, 512, %s26_s30, [#allocation4], %s2411_s23, %s2411_s23, %s2412_s24  }
  0x36   :  { %s2417_s15 = smov [#allocation8]   ;;  %s2418_s17 = smov [#allocation11]  }
  0x37   :  { %s49_s16 = sshll.u32 %s2417_s15, 4  ;;  %s77_s18 = sshll.u32 %s2418_s17, 4  ;;  %s50_s16 = int_to_ptr.vmem [resolvable:$true] %s49_s16  ;;  %s78_s18 = int_to_ptr.vmem [resolvable:$true] %s77_s18 }
  0x38   :  { %s2312_s21 = scalar_lea.hbm %s2881_s2, 1024 }
  0x39   :  { %p2313_p10 = scmp.ne.s32.totalorder %s2881_s2, %s2312_s21  ;;  %p2316_p11 = scmp.lt.u32.totalorder %s2312_s21, %s2881_s2 }
  0x3b   :  { %p2318_p12 = pnand %p2316_p11, %p2313_p10 }
  0x3d   :  { %2321 = shalt.err (!%p2318_p12)
}
  0x3e   :  { %s2322_s0 = scalar_lea.vmem %s50_s16, 1024  ;;  %p2327_p0 = scmp.lt.s32.totalorder %s50_s16, %s50_s16 }
  0x3f   :  { %p2323_p13 = scmp.ne.s32.totalorder %s50_s16, %s2322_s0  ;;  %p2328_p1 = scmp.lt.s32.totalorder %s2322_s0, %s2322_s0 }
  0x41   :  { %p2329_p2 = por %p2328_p1, %p2327_p0 }
  0x43   :  { %p2330_p3 = pnand %p2329_p2, %p2323_p13 }
  0x45   :  { %2333 = shalt.err (!%p2330_p3)
}
  0x46   :  { %55 = dma.hbm_to_vmem [thread:$0]  %s2881_s2, 1024, %s50_s16, [#allocation7], %s2415_s14, %s2415_s14, %s2416_s19  }
  0x47   :  { %s2334_s13 = scalar_lea.hbm %s2885_s6, 1024 }
  0x48   :  { %p2335_p4 = scmp.ne.s32.totalorder %s2885_s6, %s2334_s13  ;;  %p2338_p5 = scmp.lt.u32.totalorder %s2334_s13, %s2885_s6 }
  0x4a   :  { %p2340_p6 = pnand %p2338_p5, %p2335_p4 }
  0x4c   :  { %2343 = shalt.err (!%p2340_p6)
}
  0x4d   :  { %s2344_s1 = scalar_lea.vmem %s78_s18, 1024  ;;  %p2349_p8 = scmp.lt.s32.totalorder %s78_s18, %s78_s18 }
  0x4e   :  { %p2345_p7 = scmp.ne.s32.totalorder %s78_s18, %s2344_s1  ;;  %p2350_p9 = scmp.lt.s32.totalorder %s2344_s1, %s2344_s1 }
  0x50   :  { %p2351_p10 = por %p2350_p9, %p2349_p8 }
  0x52   :  { %p2352_p11 = pnand %p2351_p10, %p2345_p7 }
  0x54   :  { %2355 = shalt.err (!%p2352_p11)
}
  0x55   :  { %83 = dma.hbm_to_vmem [thread:$0]  %s2885_s6, 1024, %s78_s18, [#allocation10], %s2415_s14, %s2415_s14, %s2416_s19  }
  0x56   :  { %s2419_s20 = smov [#allocation12]   ;;  %s2356_s26 = scalar_lea.hbm %s2887_s8, 1024 }
  0x57   :  { %s91_s21 = sshll.u32 %s2419_s20, 4  ;;  %p2357_p12 = scmp.ne.s32.totalorder %s2887_s8, %s2356_s26  ;;  %s92_s21 = int_to_ptr.vmem [resolvable:$true] %s91_s21 }
  0x58   :  { %p2360_p13 = scmp.lt.u32.totalorder %s2356_s26, %s2887_s8 }
  0x5a   :  { %p2362_p0 = pnand %p2360_p13, %p2357_p12 }
  0x5c   :  { %2365 = shalt.err (!%p2362_p0)
}
  0x5d   :  { %s2366_s11 = scalar_lea.vmem %s92_s21, 1024  ;;  %p2371_p2 = scmp.lt.s32.totalorder %s92_s21, %s92_s21 }
  0x5e   :  { %p2367_p1 = scmp.ne.s32.totalorder %s92_s21, %s2366_s11  ;;  %p2372_p3 = scmp.lt.s32.totalorder %s2366_s11, %s2366_s11 }
  0x60   :  { %p2373_p4 = por %p2372_p3, %p2371_p2 }
  0x62   :  { %p2374_p5 = pnand %p2373_p4, %p2367_p1 }
  0x64   :  { %2377 = shalt.err (!%p2374_p5)
}
  0x65   :  { %97 = dma.hbm_to_vmem [thread:$0]  %s2887_s8, 1024, %s92_s21, [#allocation13], %s2415_s14, %s2415_s14, %s2416_s19  }
  0x66   :  { %2400 = dma.done.wait [#allocation4], 512  }
  0x67   :  { %2401 = vsyncadd [#allocation4], 4294966784 }
  0x68   :  { %2402 = dma.done.wait [#allocation7], 2048  }
  0x69   :  { %2403 = vsyncadd [#allocation7], 4294965248 }
  0x6a   :  { %2404 = dma.done.wait [#allocation10], 2048  }
  0x6b   :  { %2405 = vsyncadd [#allocation10], 4294965248 }
  0x6c   :  { %2406 = dma.done.wait [#allocation13], 1024  }
  0x6d   :  { %2407 = vsyncadd [#allocation13], 4294966272  ;;  %v2150_v0 = vld [vmem:[#allocation9] sm:$0xff]   ;;  %v2151_v1 = vld [vmem:[#allocation9 + $0x8] sm:$0xff]   ;;  %v2420_v28 = vmov 0.0   ;;  %vm2421_vm0 = vmmov 0  }
  0x6e   :  { %1939 = vmatprep.subr.bf16.mxu1 %v2150_v0  ;;  %v2152_v2 = vld [vmem:[#allocation9 + $0x10] sm:$0xff]   ;;  %v2154_v3 = vld [vmem:[#allocation8] sm:$0xff]   ;;  %v2156_v4 = vld [vmem:[#allocation8 + $0x8] sm:$0xff]   ;;  %vm539_vm1 = vcmask 261120   ;;  %vm801_vm2 = vcmask 523520   ;;  %vm941_vm3 = vcmask 785920  }
  0x6f   :  { %1940 = vmatpush3.bf16.msra.mxu1 %v2150_v0  ;;  %1919 = vmatprep.subr.bf16.mxu0 %v2154_v3  ;;  %v2153_v5 = vld [vmem:[#allocation9 + $0x18] sm:$0xff]   ;;  %v2158_v6 = vld [vmem:[#allocation8 + $0x10] sm:$0xff]   ;;  %v2155_v7 = vld [vmem:[#allocation9 + $0x20] sm:$0xff]   ;;  %vm1081_vm4 = vcmask 1048320   ;;  %s2424_s15 = smov [#allocation14]  }
  0x70   :  { %1941 = vmatprep.subr.bf16.mxu1 %v2151_v1  ;;  %1920 = vmatpush3.bf16.msra.mxu0 %v2154_v3  ;;  %v2160_v8 = vld [vmem:[#allocation8 + $0x18] sm:$0xff]   ;;  %v125_v9 = vld [vmem:[#allocation6] sm:$0xff]  ;;  %v126_v10 = vld [vmem:[#allocation6 + $0x8] sm:$0xff]  ;;  %s1760_s17 = sshll.u32 %s2424_s15, 4  ;;  %s1761_s17 = int_to_ptr.vmem [resolvable:$true] %s1760_s17 }
  0x71   :  { %1921 = vmatprep.subr.bf16.mxu0 %v2156_v4  ;;  %v133_v11 = vpack.c.bf16 %v126_v10, %v125_v9  ;;  %v2157_v12 = vld [vmem:[#allocation9 + $0x28] sm:$0xff]   ;;  %v2162_v13 = vld [vmem:[#allocation8 + $0x20] sm:$0xff]   ;;  %v2159_v16 = vld [vmem:[#allocation9 + $0x30] sm:$0xff]   ;;  %s2378_s1 = scalar_lea.vmem %s1761_s17, 512  ;;  %p2383_p7 = scmp.lt.s32.totalorder %s1761_s17, %s1761_s17 }
  0x72   :  { %v119_v14 = vld [vmem:[#allocation3] sm:$0xff]  ;;  %v120_v15 = vld [vmem:[#allocation3 + $0x8] sm:$0xff]  ;;  %v2161_v19 = vld [vmem:[#allocation9 + $0x38] sm:$0xff]   ;;  %p2379_p6 = scmp.ne.s32.totalorder %s1761_s17, %s2378_s1  ;;  %p2384_p8 = scmp.lt.s32.totalorder %s2378_s1, %s2378_s1 }
  0x73   :  { %1942 = vmatpush3.bf16.msra.mxu1 %v2151_v1  ;;  %1955 = vmatprep.mubr.bf16.mxu1 %v133_v11  ;;  %v2163_v17 = vld [vmem:[#allocation8 + $0x28] sm:$0xff]   ;;  %v123_v18 = vpack.c.bf16 %v120_v15, %v119_v14  ;;  %v2164_v20 = vld [vmem:[#allocation8 + $0x30] sm:$0xff]   ;;  %v128_v22 = vld [vmem:[#allocation6 + $0x18] sm:$0xff] }
  0x74   :  { %1943 = vmatprep.subr.bf16.mxu1 %v2152_v2  ;;  %1922 = vmatpush3.bf16.msra.mxu0 %v2156_v4  ;;  %v127_v21 = vld [vmem:[#allocation6 + $0x10] sm:$0xff]  ;;  %v2165_v23 = vld [vmem:[#allocation8 + $0x38] sm:$0xff]   ;;  %v129_v29 = vld [vmem:[#allocation6 + $0x20] sm:$0xff]  ;;  %p2385_p9 = por %p2384_p8, %p2383_p7 }
  0x75   :  { %1923 = vmatprep.subr.bf16.mxu0 %v2158_v6  ;;  %1935 = vmatprep.mubr.bf16.mxu0 %v123_v18  ;;  %v2570_v24 = vpack.c.bf16 %v128_v22, %v127_v21  ;;  %v121_v25 = vld [vmem:[#allocation3 + $0x10] sm:$0xff]  ;;  %v122_v26 = vld [vmem:[#allocation3 + $0x18] sm:$0xff]  ;;  %v130_v30 = vld [vmem:[#allocation6 + $0x28] sm:$0xff] }
  0x76   :  { %v124_v27 = vpack.c.bf16 %v122_v26, %v121_v25  ;;  %v2574_v31 = vpack.c.bf16 %v130_v30, %v129_v29  ;;  %v131_v32 = vld [vmem:[#allocation6 + $0x30] sm:$0xff]  ;;  %v132_v33 = vld [vmem:[#allocation6 + $0x38] sm:$0xff]  ;;  %v1784_v36 = vld [vmem:[%s2884_s5] ss:$0 sm:$0xff]  ;;  %s2422_s5 = smov 96   ;;  %p2386_p10 = pnand %p2385_p9, %p2379_p6 }
  0x77   :  { %1944 = vmatpush3.bf16.msra.mxu1 %v2152_v2  ;;  %v2576_v34 = vpack.c.bf16 %v132_v33, %v131_v32  ;;  %v1775_v39 = vld [vmem:[%s2882_s3] ss:$0 sm:$0xff]  ;;  %v2171_v10 = vld [vmem:[#allocation11 + $0x28] sm:$0xff]  }
  0x78   :  { %1945 = vmatprep.subr.bf16.mxu1 %v2153_v5  ;;  %1924 = vmatpush3.bf16.msra.mxu0 %v2158_v6  ;;  %v2167_v6 = vld [vmem:[#allocation11 + $0x8] sm:$0xff]   ;;  %v2170_v9 = vld [vmem:[#allocation11 + $0x20] sm:$0xff]  }
  0x79   :  { %1925 = vmatprep.subr.bf16.mxu0 %v2160_v8 }
  0x7b   :  { %1946 = vmatpush3.bf16.msra.mxu1 %v2153_v5  ;;  %v2166_v5 = vld [vmem:[#allocation11] sm:$0xff]  }
  0x7c   :  { %1947 = vmatprep.subr.bf16.mxu1 %v2155_v7  ;;  %1926 = vmatpush3.bf16.msra.mxu0 %v2160_v8  ;;  %v2169_v8 = vld [vmem:[#allocation11 + $0x18] sm:$0xff]  }
  0x7d   :  { %1927 = vmatprep.subr.bf16.mxu0 %v2162_v13 }
  0x7f   :  { %1948 = vmatpush3.bf16.msra.mxu1 %v2155_v7  ;;  %v2168_v7 = vld [vmem:[#allocation11 + $0x10] sm:$0xff]  }
  0x80   :  { %1949 = vmatprep.subr.bf16.mxu1 %v2157_v12  ;;  %1928 = vmatpush3.bf16.msra.mxu0 %v2162_v13 }
  0x81   :  { %1929 = vmatprep.subr.bf16.mxu0 %v2163_v17 }
  0x83   :  { %1950 = vmatpush3.bf16.msra.mxu1 %v2157_v12  ;;  %v2173_v12 = vld [vmem:[#allocation11 + $0x38] sm:$0xff]  }
  0x84   :  { %1951 = vmatprep.subr.bf16.mxu1 %v2159_v16  ;;  %1930 = vmatpush3.bf16.msra.mxu0 %v2163_v17 }
  0x85   :  { %1931 = vmatprep.subr.bf16.mxu0 %v2164_v20 }
  0x87   :  { %1952 = vmatpush3.bf16.msra.mxu1 %v2159_v16 }
  0x88   :  { %1953 = vmatprep.subr.bf16.mxu1 %v2161_v19  ;;  %1932 = vmatpush3.bf16.msra.mxu0 %v2164_v20 }
  0x89   :  { %1933 = vmatprep.subr.bf16.mxu0 %v2165_v23 }
  0x8b   :  { %1954 = vmatpush3.bf16.msra.mxu1 %v2161_v19 }
  0x8c   :  { %1934 = vmatpush3.bf16.msra.mxu0 %v2165_v23  ;;  %1987 = vmatprep.subr.bf16.mxu1 %v2420_v28 }
  0x8d   :  { %1963 = vmatprep.subr.bf16.mxu0 %v2166_v5 }
  0x8e   :  { %1956 = vmatmul.mubr.bf16.vlgmr.msra.gmra.mrb[0].mxu1 %v2570_v24 }
  0x8f   :  { %1936 = vmatmul.mubr.bf16.vlgmr.msra.gmra.mrb[0].mxu0 %v124_v27  ;;  %1959 = vmatprep.mubr.bf16.mxu1 %v2574_v31 }
  0x90   :  { %1979 = vmatprep.mubr.bf16.mxu0 %v133_v11  ;;  %1964 = vmatpush3.bf16.msra.mxu0 %v2166_v5  ;;  %v2172_v11 = vld [vmem:[#allocation11 + $0x30] sm:$0xff]  }
  0x91   :  { %1965 = vmatprep.subr.bf16.mxu0 %v2167_v6 }
  0x94   :  { %1966 = vmatpush3.bf16.msra.mxu0 %v2167_v6 }
  0x95   :  { %1967 = vmatprep.subr.bf16.mxu0 %v2168_v7 }
  0x96   :  { %1960 = vmatmul.mubr.bf16.gmra.mrb[4].mxu1 %v2576_v34 }
  0x97   :  { %1991 = vmatprep.mubr.msk.bf16.mxu1 %vm2421_vm0, %v2420_v28 }
  0x98   :  { %1968 = vmatpush3.bf16.msra.mxu0 %v2168_v7 }
  0x99   :  { %1969 = vmatprep.subr.bf16.mxu0 %v2169_v8 }
  0x9c   :  { %1970 = vmatpush3.bf16.msra.mxu0 %v2169_v8 }
  0x9d   :  { %1971 = vmatprep.subr.bf16.mxu0 %v2170_v9 }
  0xa0   :  { %1972 = vmatpush3.bf16.msra.mxu0 %v2170_v9 }
  0xa1   :  { %1973 = vmatprep.subr.bf16.mxu0 %v2171_v10 }
  0xa4   :  { %1974 = vmatpush3.bf16.msra.mxu0 %v2171_v10 }
  0xa5   :  { %1975 = vmatprep.subr.bf16.mxu0 %v2172_v11 }
  0xa8   :  { %1976 = vmatpush3.bf16.msra.mxu0 %v2172_v11 }
  0xa9   :  { %1977 = vmatprep.subr.bf16.mxu0 %v2173_v12 }
  0xac   :  { %1978 = vmatpush3.bf16.msra.mxu0 %v2173_v12 }
  0xad   :  { %2003 = vmatprep.subr.bf16.mxu0 %v2420_v28 }
  0xaf   :  { %1980 = vmatmul.mubr.bf16.vlgmr.msra.gmra.mrb[4].mxu0 %v2570_v24 }
  0xb0   :  { %1983 = vmatprep.mubr.bf16.mxu0 %v2574_v31 }
  0xb7   :  { %1984 = vmatmul.mubr.bf16.gmra.mrb[8].mxu0 %v2576_v34 }
  0xb8   :  { %2007 = vmatprep.mubr.msk.bf16.mxu0 %vm2421_vm0, %v2420_v28 }
 0x161   :  { %v1957_v35 = vpop.f32.mrb[0].mxu1 }
 0x162   :  { %v364_v37 = vpop.f32.mrb[1].mxu1  ;;  %v373_v40 = vadd.f32 %v1957_v35, %v1784_v36  ;;  %v1937_v45 = vpop.f32.mrb[0].mxu0 }
 0x163   :  { %v1958_v38 = vpop.f32.mrb[2].mxu1  ;;  %v365_v43 = vadd.f32 %v1784_v36, %v364_v37  ;;  %v251_v47 = vadd.f32 %v1937_v45, %v1775_v39  ;;  %v242_v48 = vpop.f32.mrb[1].mxu0 }
 0x164   :  { %v376_v41 = vadd.f32 %v1958_v38, %v1784_v36  ;;  %v367_v42 = vpop.f32.mrb[3].mxu1  ;;  %v243_v50 = vadd.f32 %v1775_v39, %v242_v48  ;;  %v1938_v51 = vpop.f32.mrb[2].mxu0 }
 0x165   :  { %v368_v44 = vadd.f32 %v1784_v36, %v367_v42  ;;  %v254_v52 = vadd.f32 %v1938_v51, %v1775_v39  ;;  %v245_v53 = vpop.f32.mrb[3].mxu0 }
 0x166   :  { %v2588_v46 = vpack.c.bf16 %v376_v41, %v373_v40  ;;  %v246_v55 = vadd.f32 %v1775_v39, %v245_v53 }
 0x167   :  { %v2590_v49 = vpack.c.bf16 %v368_v44, %v365_v43  ;;  %v2596_v56 = vpack.c.bf16 %v254_v52, %v251_v47 }
 0x168   :  { %666 = vrot.lane.b32.xlu1 %v2588_v46, %s2422_s5  ;;  %v2599_v57 = vpack.c.bf16 %v246_v55, %v243_v50  ;;  %v547_v58 = vsel %vm539_vm1, %v2588_v46, 0 }
 0x169   :  { %v544_v54 = vsel %vm539_vm1, %v2590_v49, 0  ;;  %v1961_v59 = vpop.f32.mrb[4].mxu1 }
 0x16a   :  { %1988 = vmatpush3.bf16.xpose.msra.mxu1 %v544_v54  ;;  %v389_v60 = vadd.f32 %v1961_v59, %v1784_v36  ;;  %v380_v61 = vpop.f32.mrb[5].mxu1 }
 0x16b   :  { %1989 = vmatprep.subr.bf16.mxu1 %v2420_v28  ;;  %v381_v62 = vadd.f32 %v1784_v36, %v380_v61  ;;  %v1962_v63 = vpop.f32.mrb[6].mxu1 }
 0x16c   :  { %806 = vrot.lane.b32.xlu1 %v2590_v49, %s2415_s14  ;;  %v392_v0 = vadd.f32 %v1962_v63, %v1784_v36  ;;  %v383_v1 = vpop.f32.mrb[7].mxu1 }
 0x16d   :  { %v384_v2 = vadd.f32 %v1784_v36, %v383_v1  ;;  %v1793_v36 = vld [vmem:[%s2886_s7] ss:$0 sm:$0xff]  ;;  %s2423_s7 = smov 32  }
 0x16e   :  { %v2610_v3 = vpack.c.bf16 %v392_v0, %v389_v60 }
 0x16f   :  { %v2612_v4 = vpack.c.bf16 %v384_v2, %v381_v62 }
 0x172   :  { %1990 = vmatpush3.bf16.xpose.msra.mxu1 %v547_v58 }
 0x173   :  { %1995 = vmatprep.subr.bf16.mxu1 %v2420_v28 }
 0x179   :  { %1992 = vmatmul.mubr.msk.bf16.vlgmr.msra.gmra.mrb[8].mxu1 %vm539_vm1, %v2599_v57 }
 0x17a   :  { %1999 = vmatprep.mubr.msk.bf16.mxu1 %vm2421_vm0, %v2420_v28 }
 0x182   :  { %v1981_v24 = vpop.f32.mrb[4].mxu0 }
 0x183   :  { %v504_v26 = vpop.f32.mrb[5].mxu0  ;;  %v513_v41 = vadd.f32 %v1981_v24, %v1793_v36 }
 0x184   :  { %v505_v37 = vadd.f32 %v1793_v36, %v504_v26  ;;  %v1982_v38 = vpop.f32.mrb[6].mxu0 }
 0x185   :  { %v507_v39 = vpop.f32.mrb[7].mxu0  ;;  %v516_v43 = vadd.f32 %v1982_v38, %v1793_v36 }
 0x186   :  { %v508_v40 = vadd.f32 %v1793_v36, %v507_v39 }
 0x187   :  { %v2641_v44 = vpack.c.bf16 %v516_v43, %v513_v41 }
 0x188   :  { %v2635_v42 = vpack.c.bf16 %v508_v40, %v505_v37 }
 0x18a   :  { %1996 = vmatpush3.bf16.msra.mxu1 %v2635_v42  ;;  %v1985_v45 = vpop.f32.mrb[8].mxu0 }
 0x18b   :  { %1997 = vmatprep.subr.bf16.mxu1 %v2420_v28  ;;  %v529_v47 = vadd.f32 %v1985_v45, %v1793_v36  ;;  %v520_v48 = vpop.f32.mrb[9].mxu0 }
 0x18c   :  { %v521_v50 = vadd.f32 %v1793_v36, %v520_v48  ;;  %v1986_v51 = vpop.f32.mrb[10].mxu0 }
 0x18d   :  { %v532_v52 = vadd.f32 %v1986_v51, %v1793_v36  ;;  %v523_v53 = vpop.f32.mrb[11].mxu0 }
 0x18e   :  { %1998 = vmatpush3.bf16.msra.mxu1 %v2641_v44  ;;  %v524_v54 = vadd.f32 %v1793_v36, %v523_v53 }
 0x18f   :  { %2019 = vmatprep.subr.bf16.mxu1 %v2420_v28  ;;  %v2647_v55 = vpack.c.bf16 %v532_v52, %v529_v47 }
 0x190   :  { %v2649_v58 = vpack.c.bf16 %v524_v54, %v521_v50 }
 0x1da   :  { %v667_v30 = vpop.permute.xlu1 %666 }
 0x1db   :  { %v675_v33 = vsel %vm539_vm1, %v667_v30, 0 }
 0x1de   :  { %v807_v59 = vpop.permute.xlu1 %806 }
 0x1df   :  { %v814_v6 = vsel %vm539_vm1, %v807_v59, 0 }
 0x24c   :  { %v583_v13 = vpop.f32.mrb[8].mxu1 }
 0x24d   :  { %v1993_v14 = vpop.f32.mrb[9].mxu1  ;;  %v590_v15 = vsel %vm539_vm1, %v583_v13, -inf }
 0x24e   :  { %591 = vmax.xlane.f32.xlu0 %v590_v15  ;;  %v586_v16 = vpop.f32.mrb[10].mxu1 }
 0x24f   :  { %v1994_v17 = vpop.f32.mrb[11].mxu1  ;;  %v593_v18 = vsel %vm539_vm1, %v586_v16, -inf }
 0x252   :  { %594 = vmax.xlane.f32.xlu0 %v593_v18 }
 0x268   :  { %664 = vrot.lane.b32.xlu0 %v2590_v49, %s2422_s5 }
 0x26c   :  { %808 = vrot.lane.b32.xlu0 %v2588_v46, %s2415_s14 }
 0x2db   :  { %v592_v19 = vpop.xlane.xlu0 %591 }
 0x2dc   :  { %v596_v20 = vsub.f32 %v583_v13, %v592_v19 }
 0x2de   :  { %v598_v21 = vmul.f32 1.442695, %v596_v20 }
 0x2df   :  { %v595_v22 = vpop.xlane.xlu0 %594 }
 0x2e0   :  { %2182 = vpow2.f32 %v598_v21  ;;  %v597_v23 = vsub.f32 %v586_v16, %v595_v22 }
 0x2e2   :  { %v600_v25 = vmul.f32 1.442695, %v597_v23 }
 0x2e3   :  { %v665_v27 = vpop.permute.xlu0 %664 }
 0x2e4   :  { %2184 = vpow2.f32 %v600_v25  ;;  %v672_v29 = vsel %vm539_vm1, %v665_v27, 0 }
 0x2e5   :  { %2004 = vmatpush3.bf16.xpose.msra.mxu0 %v672_v29 }
 0x2e6   :  { %2005 = vmatprep.subr.bf16.mxu0 %v2420_v28 }
 0x2e7   :  { %v809_v7 = vpop.permute.xlu0 %808 }
 0x2e8   :  { %v817_v8 = vsel %vm539_vm1, %v809_v7, 0 }
 0x2ea   :  { %v2183_v31 = vpop.eup %2182 }
 0x2eb   :  { %v602_v32 = vsel %vm539_vm1, %v2183_v31, 0.0 }
 0x2ec   :  { %603 = vadd.xlane.f32.xlu1 %v602_v32 }
 0x2ed   :  { %2006 = vmatpush3.bf16.xpose.msra.mxu0 %v675_v33 }
 0x2ee   :  { %v2185_v34 = vpop.eup %2184  ;;  %2011 = vmatprep.subr.bf16.mxu0 %v2420_v28 }
 0x2ef   :  { %v605_v35 = vsel %vm539_vm1, %v2185_v34, 0.0 }
 0x2f0   :  { %606 = vadd.xlane.f32.xlu1 %v605_v35 }
 0x301   :  { %660 = vrot.lane.b32.xlu1 %v2599_v57, %s2422_s5 }
 0x305   :  { %804 = vrot.lane.b32.xlu1 %v2599_v57, %s2415_s14 }
 0x379   :  { %v604_v60 = vpop.xlane.xlu1 %603 }
 0x37a   :  { %2186 = vrcp.f32 %v604_v60 }
 0x37d   :  { %v607_v61 = vpop.xlane.xlu1 %606 }
 0x37e   :  { %2188 = vrcp.f32 %v607_v61 }
 0x381   :  { %v661_v62 = vpop.permute.xlu1 %660 }
 0x382   :  { %2008 = vmatmul.mubr.msk.bf16.vlgmr.msra.gmra.mrb[12].mxu0 %vm539_vm1, %v661_v62 }
 0x383   :  { %2015 = vmatprep.mubr.msk.bf16.mxu0 %vm2421_vm0, %v2420_v28 }
 0x384   :  { %v2187_v63 = vpop.eup %2186 }
 0x385   :  { %v610_v1 = vmul.f32 %v2187_v63, %v2183_v31  ;;  %v805_v9 = vpop.permute.xlu1 %804 }
 0x388   :  { %v2189_v0 = vpop.eup %2188 }
 0x389   :  { %v611_v2 = vmul.f32 %v2189_v0, %v2185_v34 }
 0x38b   :  { %v612_v5 = vpack.c.bf16 %v611_v2, %v610_v1 }
 0x38d   :  { %2000 = vmatmul.mubr.msk.bf16.vlgmr.msra.gmra.mrb[12].mxu1 %vm539_vm1, %v612_v5 }
 0x38e   :  { %2020 = vmatpush3.bf16.xpose.msra.mxu1 %v814_v6  ;;  %2023 = vmatprep.mubr.msk.bf16.mxu1 %vm2421_vm0, %v2420_v28 }
 0x38f   :  { %2021 = vmatprep.subr.bf16.mxu1 %v2420_v28 }
 0x396   :  { %2022 = vmatpush3.bf16.xpose.msra.mxu1 %v817_v8 }
 0x397   :  { %2043 = vmatprep.subr.bf16.mxu1 %v2420_v28 }
 0x39d   :  { %2024 = vmatmul.mubr.msk.bf16.vlgmr.msra.gmra.mrb[16].mxu1 %vm539_vm1, %v805_v9 }
 0x39e   :  { %2047 = vmatprep.mubr.msk.bf16.mxu1 %vm2421_vm0, %v2420_v28 }
 0x455   :  { %v711_v10 = vpop.f32.mrb[12].mxu0 }
 0x456   :  { %v2009_v11 = vpop.f32.mrb[13].mxu0  ;;  %v718_v12 = vsel %vm539_vm1, %v711_v10, -inf }
 0x457   :  { %719 = vmax.xlane.f32.xlu0 %v718_v12  ;;  %v714_v13 = vpop.f32.mrb[14].mxu0 }
 0x458   :  { %v2010_v14 = vpop.f32.mrb[15].mxu0  ;;  %v721_v15 = vsel %vm539_vm1, %v714_v13, -inf }
 0x459   :  { %722 = vmax.xlane.f32.xlu1 %v721_v15 }
 0x460   :  { %v650_v16 = vpop.f32.mrb[12].mxu1 }
 0x461   :  { %657 = vst.msk [vmem:[#allocation2] sm:$0xff] %vm539_vm1, %v650_v16  ;;  %v2001_v17 = vpop.f32.mrb[13].mxu1 }
 0x462   :  { %v653_v18 = vpop.f32.mrb[14].mxu1 }
 0x463   :  { %658 = vst.msk [vmem:[#allocation2 + $0x8] sm:$0xff] %vm539_vm1, %v653_v18  ;;  %v2002_v19 = vpop.f32.mrb[15].mxu1 }
 0x470   :  { %v853_v20 = vpop.f32.mrb[16].mxu1 }
 0x471   :  { %v2025_v21 = vpop.f32.mrb[17].mxu1  ;;  %v860_v22 = vsel %vm539_vm1, %v853_v20, -inf }
 0x472   :  { %861 = vmax.xlane.f32.xlu0 %v860_v22  ;;  %v856_v23 = vpop.f32.mrb[18].mxu1 }
 0x473   :  { %v2026_v24 = vpop.f32.mrb[19].mxu1  ;;  %v863_v25 = vsel %vm539_vm1, %v856_v23, -inf }
 0x476   :  { %864 = vmax.xlane.f32.xlu0 %v863_v25 }
 0x4e4   :  { %v720_v26 = vpop.xlane.xlu0 %719 }
 0x4e5   :  { %v724_v27 = vsub.f32 %v711_v10, %v720_v26 }
 0x4e6   :  { %v723_v29 = vpop.xlane.xlu1 %722 }
 0x4e7   :  { %v726_v30 = vmul.f32 1.442695, %v724_v27  ;;  %v725_v31 = vsub.f32 %v714_v13, %v723_v29 }
 0x4e9   :  { %2190 = vpow2.f32 %v726_v30  ;;  %v728_v32 = vmul.f32 1.442695, %v725_v31 }
 0x4eb   :  { %2192 = vpow2.f32 %v728_v32 }
 0x4f3   :  { %v2191_v33 = vpop.eup %2190 }
 0x4f4   :  { %v730_v34 = vsel %vm539_vm1, %v2191_v33, 0.0 }
 0x4f5   :  { %v2193_v35 = vpop.eup %2192  ;;  %731 = vadd.xlane.f32.xlu0 %v730_v34 }
 0x4f6   :  { %v733_v36 = vsel %vm539_vm1, %v2193_v35, 0.0 }
 0x4f7   :  { %734 = vadd.xlane.f32.xlu1 %v733_v36 }
 0x4ff   :  { %v862_v37 = vpop.xlane.xlu0 %861 }
 0x500   :  { %v866_v38 = vsub.f32 %v853_v20, %v862_v37 }
 0x502   :  { %v868_v39 = vmul.f32 1.442695, %v866_v38 }
 0x503   :  { %v865_v40 = vpop.xlane.xlu0 %864 }
 0x504   :  { %2194 = vpow2.f32 %v868_v39  ;;  %v867_v41 = vsub.f32 %v856_v23, %v865_v40 }
 0x506   :  { %v870_v43 = vmul.f32 1.442695, %v867_v41 }
 0x508   :  { %745 = vrot.lane.b32.xlu1 %v2641_v44, %s2422_s5  ;;  %2196 = vpow2.f32 %v870_v43 }
 0x50b   :  { %743 = vrot.lane.b32.xlu0 %v2635_v42, %s2422_s5 }
 0x50c   :  { %883 = vrot.lane.b32.xlu1 %v2635_v42, %s2415_s14 }
 0x50e   :  { %v2195_v45 = vpop.eup %2194 }
 0x50f   :  { %v872_v47 = vsel %vm539_vm1, %v2195_v45, 0.0 }
 0x510   :  { %885 = vrot.lane.b32.xlu1 %v2641_v44, %s2415_s14 }
 0x512   :  { %v2197_v48 = vpop.eup %2196 }
 0x513   :  { %v875_v50 = vsel %vm539_vm1, %v2197_v48, 0.0 }
 0x52a   :  { %873 = vadd.xlane.f32.xlu0 %v872_v47 }
 0x534   :  { %876 = vadd.xlane.f32.xlu1 %v875_v50  ;;  %v1088_v50 = vsel %vm539_vm1, %v2612_v4, 0 }
 0x540   :  { %946 = vrot.lane.b32.xlu0 %v2590_v49, %s2423_s7 }
 0x544   :  { %944 = vrot.lane.b32.xlu0 %v2599_v57, %s2423_s7 }
 0x545   :  { %948 = vrot.lane.b32.xlu1 %v2588_v46, %s2423_s7 }
 0x582   :  { %v732_v51 = vpop.xlane.xlu0 %731 }
 0x583   :  { %2198 = vrcp.f32 %v732_v51 }
 0x584   :  { %v735_v52 = vpop.xlane.xlu1 %734 }
 0x585   :  { %2200 = vrcp.f32 %v735_v52 }
 0x586   :  { %v744_v53 = vpop.permute.xlu0 %743 }
 0x587   :  { %2012 = vmatpush3.bf16.msra.mxu0 %v744_v53 }
 0x588   :  { %2013 = vmatprep.subr.bf16.mxu0 %v2420_v28  ;;  %v746_v54 = vpop.permute.xlu1 %745 }
 0x58b   :  { %2014 = vmatpush3.bf16.msra.mxu0 %v746_v54 }
 0x58c   :  { %2027 = vmatprep.subr.bf16.mxu0 %v2420_v28  ;;  %v884_v57 = vpop.permute.xlu1 %883 }
 0x58d   :  { %v2199_v59 = vpop.eup %2198 }
 0x58e   :  { %v738_v60 = vmul.f32 %v2199_v59, %v2191_v33 }
 0x58f   :  { %v2201_v49 = vpop.eup %2200 }
 0x590   :  { %v739_v61 = vmul.f32 %v2201_v49, %v2193_v35  ;;  %v886_v46 = vpop.permute.xlu1 %885 }
 0x592   :  { %v740_v62 = vpack.c.bf16 %v739_v61, %v738_v60 }
 0x594   :  { %2016 = vmatmul.mubr.msk.bf16.vlgmr.msra.gmra.mrb[16].mxu0 %vm539_vm1, %v740_v62 }
 0x595   :  { %2028 = vmatpush3.bf16.msra.mxu0 %v884_v57  ;;  %2031 = vmatprep.mubr.msk.bf16.mxu0 %vm2421_vm0, %v2420_v28 }
 0x596   :  { %2029 = vmatprep.subr.bf16.mxu0 %v2420_v28 }
 0x599   :  { %2030 = vmatpush3.bf16.msra.mxu0 %v886_v46 }
 0x59a   :  { %2035 = vmatprep.subr.bf16.mxu0 %v2420_v28 }
 0x5b7   :  { %v874_v63 = vpop.xlane.xlu0 %873 }
 0x5b8   :  { %2202 = vrcp.f32 %v874_v63 }
 0x5bb   :  { %v947_v7 = vpop.permute.xlu0 %946 }
 0x5bc   :  { %v954_v9 = vsel %vm539_vm1, %v947_v7, 0 }
 0x5bf   :  { %v945_v12 = vpop.permute.xlu0 %944 }
 0x5c1   :  { %v877_v0 = vpop.xlane.xlu1 %876 }
 0x5c2   :  { %2204 = vrcp.f32 %v877_v0  ;;  %v2203_v1 = vpop.eup %2202 }
 0x5c3   :  { %v880_v5 = vmul.f32 %v2203_v1, %v2195_v45 }
 0x5c5   :  { %v949_v10 = vpop.permute.xlu1 %948 }
 0x5c6   :  { %v957_v11 = vsel %vm539_vm1, %v949_v10, 0 }
 0x5cc   :  { %v2205_v2 = vpop.eup %2204 }
 0x5cd   :  { %v881_v6 = vmul.f32 %v2205_v2, %v2197_v48 }
 0x5cf   :  { %v882_v8 = vpack.c.bf16 %v881_v6, %v880_v5 }
 0x5d1   :  { %2032 = vmatmul.mubr.msk.bf16.vlgmr.msra.gmra.mrb[20].mxu0 %vm539_vm1, %v882_v8 }
 0x5d2   :  { %2036 = vmatpush3.bf16.xpose.msra.mxu0 %v954_v9  ;;  %2039 = vmatprep.mubr.msk.bf16.mxu0 %vm2421_vm0, %v2420_v28 }
 0x5d3   :  { %2037 = vmatprep.subr.bf16.mxu0 %v2420_v28 }
 0x5da   :  { %2038 = vmatpush3.bf16.xpose.msra.mxu0 %v957_v11 }
 0x5db   :  { %2059 = vmatprep.subr.bf16.mxu0 %v2420_v28 }
 0x5e1   :  { %2040 = vmatmul.mubr.msk.bf16.vlgmr.msra.gmra.mrb[24].mxu0 %vm539_vm1, %v945_v12 }
 0x5e2   :  { %2060 = vmatpush3.bf16.msra.mxu0 %v2649_v58  ;;  %2063 = vmatprep.mubr.msk.bf16.mxu0 %vm2421_vm0, %v2420_v28 }
 0x5e3   :  { %2061 = vmatprep.subr.bf16.mxu0 %v2420_v28 }
 0x5e6   :  { %2062 = vmatpush3.bf16.msra.mxu0 %v2647_v55 }
 0x5e7   :  { %2067 = vmatprep.subr.bf16.mxu0 %v2420_v28 }
 0x667   :  { %v2709_v13 = vpop.f32.mrb[16].mxu0 }
 0x668   :  { %v2017_v14 = vpop.f32.mrb[17].mxu0 }
 0x669   :  { %v2711_v15 = vpop.f32.mrb[18].mxu0 }
 0x66a   :  { %v2018_v16 = vpop.f32.mrb[19].mxu0 }
 0x6a4   :  { %v2713_v17 = vpop.f32.mrb[20].mxu0 }
 0x6a5   :  { %v2033_v18 = vpop.f32.mrb[21].mxu0 }
 0x6a6   :  { %v2715_v19 = vpop.f32.mrb[22].mxu0 }
 0x6a7   :  { %v2034_v20 = vpop.f32.mrb[23].mxu0 }
 0x6b4   :  { %v993_v21 = vpop.f32.mrb[24].mxu0 }
 0x6b5   :  { %v2041_v22 = vpop.f32.mrb[25].mxu0  ;;  %v1000_v23 = vsel %vm539_vm1, %v993_v21, -inf }
 0x6b6   :  { %1001 = vmax.xlane.f32.xlu1 %v1000_v23  ;;  %v996_v24 = vpop.f32.mrb[26].mxu0 }
 0x6b7   :  { %v2042_v25 = vpop.f32.mrb[27].mxu0  ;;  %v1003_v26 = vsel %vm539_vm1, %v996_v24, -inf }
 0x6b8   :  { %1004 = vmax.xlane.f32.xlu0 %v1003_v26 }
 0x6c7   :  { %1023 = vrot.lane.b32.xlu1 %v2635_v42, %s2423_s7 }
 0x743   :  { %v1002_v27 = vpop.xlane.xlu1 %1001 }
 0x744   :  { %v1006_v29 = vsub.f32 %v993_v21, %v1002_v27 }
 0x745   :  { %v1005_v30 = vpop.xlane.xlu0 %1004 }
 0x746   :  { %v1008_v31 = vmul.f32 1.442695, %v1006_v29  ;;  %v1007_v32 = vsub.f32 %v996_v24, %v1005_v30 }
 0x747   :  { %v1024_v33 = vpop.permute.xlu1 %1023 }
 0x748   :  { %2206 = vpow2.f32 %v1008_v31  ;;  %v1010_v34 = vmul.f32 1.442695, %v1007_v32  ;;  %2044 = vmatpush3.bf16.msra.mxu1 %v1024_v33 }
 0x749   :  { %2045 = vmatprep.subr.bf16.mxu1 %v2420_v28 }
 0x74a   :  { %2208 = vpow2.f32 %v1010_v34 }
 0x752   :  { %v2207_v35 = vpop.eup %2206 }
 0x753   :  { %v1012_v36 = vsel %vm539_vm1, %v2207_v35, 0.0 }
 0x754   :  { %v2209_v37 = vpop.eup %2208  ;;  %1013 = vadd.xlane.f32.xlu0 %v1012_v36 }
 0x755   :  { %v1015_v38 = vsel %vm539_vm1, %v2209_v37, 0.0 }
 0x758   :  { %1016 = vadd.xlane.f32.xlu0 %v1015_v38 }
 0x76e   :  { %1025 = vrot.lane.b32.xlu0 %v2641_v44, %s2423_s7  ;;  %v1091_v44 = vsel %vm539_vm1, %v2610_v3, 0 }
 0x7e1   :  { %v1014_v42 = vpop.xlane.xlu0 %1013 }
 0x7e2   :  { %2210 = vrcp.f32 %v1014_v42 }
 0x7e5   :  { %v1017_v39 = vpop.xlane.xlu0 %1016 }
 0x7e6   :  { %2212 = vrcp.f32 %v1017_v39 }
 0x7e9   :  { %v1026_v40 = vpop.permute.xlu0 %1025 }
 0x7ea   :  { %2046 = vmatpush3.bf16.msra.mxu1 %v1026_v40 }
 0x7eb   :  { %2051 = vmatprep.subr.bf16.mxu1 %v2420_v28 }
 0x7ec   :  { %v2211_v41 = vpop.eup %2210 }
 0x7ed   :  { %v1020_v45 = vmul.f32 %v2211_v41, %v2207_v35 }
 0x7f0   :  { %v2213_v43 = vpop.eup %2212 }
 0x7f1   :  { %v1021_v47 = vmul.f32 %v2213_v43, %v2209_v37 }
 0x7f3   :  { %v1022_v48 = vpack.c.bf16 %v1021_v47, %v1020_v45 }
 0x7f5   :  { %2048 = vmatmul.mubr.msk.bf16.vlgmr.msra.gmra.mrb[20].mxu1 %vm539_vm1, %v1022_v48 }
 0x7f6   :  { %2052 = vmatpush3.bf16.xpose.msra.mxu1 %v1088_v50  ;;  %2055 = vmatprep.mubr.msk.bf16.mxu1 %vm2421_vm0, %v2420_v28 }
 0x7f7   :  { %2053 = vmatprep.subr.bf16.mxu1 %v2420_v28 }
 0x7fe   :  { %2054 = vmatpush3.bf16.xpose.msra.mxu1 %v1091_v44 }
 0x7ff   :  { %2075 = vmatprep.subr.bf16.mxu1 %v2420_v28 }
 0x805   :  { %2056 = vmatmul.mubr.msk.bf16.vlgmr.msra.gmra.mrb[24].mxu1 %vm539_vm1, %v2596_v56 }
 0x806   :  { %2079 = vmatprep.mubr.msk.bf16.mxu1 %vm2421_vm0, %v2420_v28 }
 0x8c8   :  { %v2740_v51 = vpop.f32.mrb[20].mxu1 }
 0x8c9   :  { %v2049_v52 = vpop.f32.mrb[21].mxu1 }
 0x8ca   :  { %v2742_v53 = vpop.f32.mrb[22].mxu1 }
 0x8cb   :  { %v2050_v54 = vpop.f32.mrb[23].mxu1 }
 0x8d8   :  { %v1127_v59 = vpop.f32.mrb[24].mxu1 }
 0x8d9   :  { %v2057_v49 = vpop.f32.mrb[25].mxu1  ;;  %v1134_v60 = vsel %vm539_vm1, %v1127_v59, -inf }
 0x8da   :  { %1135 = vmax.xlane.f32.xlu1 %v1134_v60  ;;  %v1130_v61 = vpop.f32.mrb[26].mxu1 }
 0x8db   :  { %v2058_v57 = vpop.f32.mrb[27].mxu1  ;;  %v1137_v62 = vsel %vm539_vm1, %v1130_v61, -inf }
 0x8dc   :  { %1138 = vmax.xlane.f32.xlu0 %v1137_v62 }
 0x967   :  { %v1136_v46 = vpop.xlane.xlu1 %1135 }
 0x968   :  { %v1140_v63 = vsub.f32 %v1127_v59, %v1136_v46 }
 0x969   :  { %v1139_v0 = vpop.xlane.xlu0 %1138 }
 0x96a   :  { %v1142_v1 = vmul.f32 1.442695, %v1140_v63  ;;  %v1141_v2 = vsub.f32 %v1130_v61, %v1139_v0 }
 0x96c   :  { %2214 = vpow2.f32 %v1142_v1  ;;  %v1144_v5 = vmul.f32 1.442695, %v1141_v2 }
 0x96e   :  { %2216 = vpow2.f32 %v1144_v5 }
 0x976   :  { %v2215_v6 = vpop.eup %2214 }
 0x977   :  { %v1146_v7 = vsel %vm539_vm1, %v2215_v6, 0.0 }
 0x978   :  { %v2217_v8 = vpop.eup %2216  ;;  %1147 = vadd.xlane.f32.xlu1 %v1146_v7 }
 0x979   :  { %v1149_v9 = vsel %vm539_vm1, %v2217_v8, 0.0 }
 0x97a   :  { %1150 = vadd.xlane.f32.xlu0 %v1149_v9 }
 0x989   :  { %1208 = vrot.lane.b32.xlu1 %v2612_v4, %s2422_s5 }
 0x98d   :  { %1204 = vrot.lane.b32.xlu1 %v2596_v56, %s2422_s5 }
 0x990   :  { %1210 = vrot.lane.b32.xlu0 %v2610_v3, %s2422_s5 }
 0xa05   :  { %v1148_v10 = vpop.xlane.xlu1 %1147 }
 0xa06   :  { %2218 = vrcp.f32 %v1148_v10 }
 0xa07   :  { %v1151_v11 = vpop.xlane.xlu0 %1150 }
 0xa08   :  { %2220 = vrcp.f32 %v1151_v11 }
 0xa09   :  { %v1209_v20 = vpop.permute.xlu1 %1208 }
 0xa0a   :  { %v1216_v22 = vsel %vm539_vm1, %v1209_v20, 0 }
 0xa0b   :  { %v1211_v23 = vpop.permute.xlu0 %1210 }
 0xa0c   :  { %v1219_v24 = vsel %vm539_vm1, %v1211_v23, 0 }
 0xa0d   :  { %v1205_v25 = vpop.permute.xlu1 %1204 }
 0xa10   :  { %v2219_v12 = vpop.eup %2218 }
 0xa11   :  { %v1154_v16 = vmul.f32 %v2219_v12, %v2215_v6 }
 0xa12   :  { %v2221_v14 = vpop.eup %2220 }
 0xa13   :  { %v1155_v18 = vmul.f32 %v2221_v14, %v2217_v8 }
 0xa15   :  { %v1156_v21 = vpack.c.bf16 %v1155_v18, %v1154_v16 }
 0xa17   :  { %2064 = vmatmul.mubr.msk.bf16.vlgmr.msra.gmra.mrb[28].mxu0 %vm539_vm1, %v1156_v21 }
 0xa18   :  { %2068 = vmatpush3.bf16.xpose.msra.mxu0 %v1216_v22  ;;  %2071 = vmatprep.mubr.msk.bf16.mxu0 %vm2421_vm0, %v2420_v28 }
 0xa19   :  { %2069 = vmatprep.subr.bf16.mxu0 %v2420_v28 }
 0xa20   :  { %2070 = vmatpush3.bf16.xpose.msra.mxu0 %v1219_v24 }
 0xa21   :  { %2091 = vmatprep.subr.bf16.mxu0 %v2420_v28 }
 0xa27   :  { %2072 = vmatmul.mubr.msk.bf16.vlgmr.msra.gmra.mrb[32].mxu0 %vm539_vm1, %v1205_v25 }
 0xa28   :  { %2095 = vmatprep.mubr.msk.bf16.mxu0 %vm2421_vm0, %v2420_v28 }
 0xaea   :  { %v1194_v26 = vpop.f32.mrb[28].mxu0 }
 0xaeb   :  { %1201 = vst.msk [vmem:[#allocation2 + $0x10] sm:$0xff] %vm539_vm1, %v1194_v26  ;;  %v2065_v27 = vpop.f32.mrb[29].mxu0 }
 0xaec   :  { %v1197_v29 = vpop.f32.mrb[30].mxu0 }
 0xaed   :  { %1202 = vst.msk [vmem:[#allocation2 + $0x18] sm:$0xff] %vm539_vm1, %v1197_v29  ;;  %v2066_v30 = vpop.f32.mrb[31].mxu0 }
 0xafa   :  { %v1255_v31 = vpop.f32.mrb[32].mxu0 }
 0xafb   :  { %v2073_v32 = vpop.f32.mrb[33].mxu0  ;;  %v1262_v33 = vsel %vm539_vm1, %v1255_v31, -inf }
 0xafc   :  { %1263 = vmax.xlane.f32.xlu1 %v1262_v33  ;;  %v1258_v34 = vpop.f32.mrb[34].mxu0 }
 0xafd   :  { %v2074_v35 = vpop.f32.mrb[35].mxu0  ;;  %v1265_v36 = vsel %vm539_vm1, %v1258_v34, -inf }
 0xafe   :  { %1266 = vmax.xlane.f32.xlu0 %v1265_v36 }
 0xb0d   :  { %1289 = vrot.lane.b32.xlu1 %v2647_v55, %s2422_s5 }
 0xb11   :  { %1349 = vrot.lane.b32.xlu1 %v2612_v4, %s2415_s14 }
 0xb89   :  { %v1264_v37 = vpop.xlane.xlu1 %1263 }
 0xb8a   :  { %v1268_v38 = vsub.f32 %v1255_v31, %v1264_v37 }
 0xb8b   :  { %v1267_v42 = vpop.xlane.xlu0 %1266 }
 0xb8c   :  { %v1270_v39 = vmul.f32 1.442695, %v1268_v38  ;;  %v1269_v40 = vsub.f32 %v1258_v34, %v1267_v42 }
 0xb8d   :  { %v1290_v50 = vpop.permute.xlu1 %1289 }
 0xb8e   :  { %2222 = vpow2.f32 %v1270_v39  ;;  %v1272_v41 = vmul.f32 1.442695, %v1269_v40 }
 0xb90   :  { %2224 = vpow2.f32 %v1272_v41 }
 0xb91   :  { %v1350_v44 = vpop.permute.xlu1 %1349 }
 0xb92   :  { %v1357_v46 = vsel %vm539_vm1, %v1350_v44, 0 }
 0xb98   :  { %v2223_v43 = vpop.eup %2222 }
 0xb99   :  { %v1274_v45 = vsel %vm539_vm1, %v2223_v43, 0.0 }
 0xb9a   :  { %v2225_v47 = vpop.eup %2224  ;;  %1275 = vadd.xlane.f32.xlu0 %v1274_v45 }
 0xb9b   :  { %v1277_v48 = vsel %vm539_vm1, %v2225_v47, 0.0 }
 0xb9c   :  { %1278 = vadd.xlane.f32.xlu1 %v1277_v48 }
 0xbad   :  { %1351 = vrot.lane.b32.xlu1 %v2610_v3, %s2415_s14 }
 0xbb0   :  { %1287 = vrot.lane.b32.xlu0 %v2649_v58, %s2422_s5 }
 0xbb4   :  { %1347 = vrot.lane.b32.xlu0 %v2596_v56, %s2415_s14 }
 0xc27   :  { %v1276_v52 = vpop.xlane.xlu0 %1275 }
 0xc28   :  { %2226 = vrcp.f32 %v1276_v52 }
 0xc29   :  { %v1279_v54 = vpop.xlane.xlu1 %1278 }
 0xc2a   :  { %2228 = vrcp.f32 %v1279_v54 }
 0xc2b   :  { %v1288_v59 = vpop.permute.xlu0 %1287 }
 0xc2c   :  { %2076 = vmatpush3.bf16.msra.mxu1 %v1288_v59 }
 0xc2d   :  { %2077 = vmatprep.subr.bf16.mxu1 %v2420_v28  ;;  %v1352_v63 = vpop.permute.xlu1 %1351 }
 0xc2e   :  { %v1360_v0 = vsel %vm539_vm1, %v1352_v63, 0 }
 0xc2f   :  { %v1348_v1 = vpop.permute.xlu0 %1347 }
 0xc30   :  { %2078 = vmatpush3.bf16.msra.mxu1 %v1290_v50 }
 0xc31   :  { %2083 = vmatprep.subr.bf16.mxu1 %v2420_v28 }
 0xc32   :  { %v2227_v49 = vpop.eup %2226 }
 0xc33   :  { %v1282_v61 = vmul.f32 %v2227_v49, %v2223_v43 }
 0xc34   :  { %v2229_v60 = vpop.eup %2228 }
 0xc35   :  { %v1283_v57 = vmul.f32 %v2229_v60, %v2225_v47 }
 0xc37   :  { %v1284_v62 = vpack.c.bf16 %v1283_v57, %v1282_v61 }
 0xc39   :  { %2080 = vmatmul.mubr.msk.bf16.vlgmr.msra.gmra.mrb[28].mxu1 %vm539_vm1, %v1284_v62 }
 0xc3a   :  { %2084 = vmatpush3.bf16.xpose.msra.mxu1 %v1357_v46  ;;  %2087 = vmatprep.mubr.msk.bf16.mxu1 %vm2421_vm0, %v2420_v28 }
 0xc3b   :  { %2085 = vmatprep.subr.bf16.mxu1 %v2420_v28 }
 0xc42   :  { %2086 = vmatpush3.bf16.xpose.msra.mxu1 %v1360_v0 }
 0xc43   :  { %2107 = vmatprep.subr.bf16.mxu1 %v2420_v28 }
 0xc49   :  { %2088 = vmatmul.mubr.msk.bf16.vlgmr.msra.gmra.mrb[32].mxu1 %vm539_vm1, %v1348_v1 }
 0xc4a   :  { %2111 = vmatprep.mubr.msk.bf16.mxu1 %vm2421_vm0, %v2420_v28 }
 0xd0c   :  { %v2792_v2 = vpop.f32.mrb[28].mxu1 }
 0xd0d   :  { %v2081_v5 = vpop.f32.mrb[29].mxu1 }
 0xd0e   :  { %v2794_v6 = vpop.f32.mrb[30].mxu1 }
 0xd0f   :  { %v2082_v7 = vpop.f32.mrb[31].mxu1 }
 0xd1c   :  { %v1396_v8 = vpop.f32.mrb[32].mxu1 }
 0xd1d   :  { %v2089_v9 = vpop.f32.mrb[33].mxu1  ;;  %v1403_v10 = vsel %vm539_vm1, %v1396_v8, -inf }
 0xd1e   :  { %1404 = vmax.xlane.f32.xlu1 %v1403_v10  ;;  %v1399_v11 = vpop.f32.mrb[34].mxu1 }
 0xd1f   :  { %v2090_v12 = vpop.f32.mrb[35].mxu1  ;;  %v1406_v14 = vsel %vm539_vm1, %v1399_v11, -inf }
 0xd20   :  { %1407 = vmax.xlane.f32.xlu0 %v1406_v14 }
 0xd2f   :  { %1426 = vrot.lane.b32.xlu1 %v2649_v58, %s2415_s14 }
 0xd33   :  { %1488 = vrot.lane.b32.xlu1 %v2612_v4, %s2423_s7 }
 0xd37   :  { %1490 = vrot.lane.b32.xlu1 %v2610_v3, %s2423_s7 }
 0xd3b   :  { %1486 = vrot.lane.b32.xlu1 %v2596_v56, %s2423_s7 }
 0xdab   :  { %v1405_v16 = vpop.xlane.xlu1 %1404 }
 0xdac   :  { %v1409_v18 = vsub.f32 %v1396_v8, %v1405_v16 }
 0xdad   :  { %v1408_v20 = vpop.xlane.xlu0 %1407 }
 0xdae   :  { %v1411_v21 = vmul.f32 1.442695, %v1409_v18  ;;  %v1410_v22 = vsub.f32 %v1399_v11, %v1408_v20  ;;  %v2174_v20 = vld [vmem:[#allocation12] sm:$0xff]  }
 0xdaf   :  { %v1427_v23 = vpop.permute.xlu1 %1426 }
 0xdb0   :  { %2230 = vpow2.f32 %v1411_v21  ;;  %v1413_v24 = vmul.f32 1.442695, %v1410_v22  ;;  %2092 = vmatpush3.bf16.msra.mxu0 %v1427_v23  ;;  %v2175_v21 = vld [vmem:[#allocation12 + $0x8] sm:$0xff]   ;;  %v2176_v22 = vld [vmem:[#allocation12 + $0x10] sm:$0xff]   ;;  %v2177_v23 = vld [vmem:[#allocation12 + $0x18] sm:$0xff]  }
 0xdb1   :  { %2093 = vmatprep.subr.bf16.mxu0 %v2420_v28 }
 0xdb2   :  { %2232 = vpow2.f32 %v1413_v24  ;;  %v2178_v24 = vld [vmem:[#allocation12 + $0x20] sm:$0xff]  }
 0xdb3   :  { %v1489_v34 = vpop.permute.xlu1 %1488 }
 0xdb4   :  { %v1496_v36 = vsel %vm539_vm1, %v1489_v34, 0 }
 0xdb7   :  { %v1491_v37 = vpop.permute.xlu1 %1490 }
 0xdb8   :  { %v1499_v38 = vsel %vm539_vm1, %v1491_v37, 0 }
 0xdba   :  { %v2231_v25 = vpop.eup %2230 }
 0xdbb   :  { %v1415_v4 = vsel %vm539_vm1, %v2231_v25, 0.0  ;;  %v1487_v42 = vpop.permute.xlu1 %1486 }
 0xdbc   :  { %v2233_v26 = vpop.eup %2232  ;;  %1416 = vadd.xlane.f32.xlu0 %v1415_v4  ;;  %v2180_v4 = vld [vmem:[#allocation12 + $0x30] sm:$0xff]  }
 0xdbd   :  { %v1418_v3 = vsel %vm539_vm1, %v2233_v26, 0.0 }
 0xdc0   :  { %1419 = vadd.xlane.f32.xlu0 %v1418_v3 }
 0xdd6   :  { %1428 = vrot.lane.b32.xlu0 %v2647_v55, %s2415_s14 }
 0xe49   :  { %v1417_v56 = vpop.xlane.xlu0 %1416 }
 0xe4a   :  { %2234 = vrcp.f32 %v1417_v56 }
 0xe4d   :  { %v1420_v27 = vpop.xlane.xlu0 %1419 }
 0xe4e   :  { %2236 = vrcp.f32 %v1420_v27 }
 0xe51   :  { %v1429_v29 = vpop.permute.xlu0 %1428 }
 0xe52   :  { %2094 = vmatpush3.bf16.msra.mxu0 %v1429_v29 }
 0xe53   :  { %2099 = vmatprep.subr.bf16.mxu0 %v2420_v28 }
 0xe54   :  { %v2235_v30 = vpop.eup %2234 }
 0xe55   :  { %v1423_v32 = vmul.f32 %v2235_v30, %v2231_v25  ;;  %v2179_v25 = vld [vmem:[#allocation12 + $0x28] sm:$0xff]  }
 0xe58   :  { %v2237_v31 = vpop.eup %2236 }
 0xe59   :  { %v1424_v33 = vmul.f32 %v2237_v31, %v2233_v26  ;;  %v2181_v26 = vld [vmem:[#allocation12 + $0x38] sm:$0xff]  }
 0xe5b   :  { %v1425_v35 = vpack.c.bf16 %v1424_v33, %v1423_v32 }
 0xe5d   :  { %2096 = vmatmul.mubr.msk.bf16.vlgmr.msra.gmra.mrb[36].mxu0 %vm539_vm1, %v1425_v35  ;;  %v1818_v35 = vld [vmem:[%s2888_s9] ss:$0 sm:$0xff] }
 0xe5e   :  { %2100 = vmatpush3.bf16.xpose.msra.mxu0 %v1496_v36  ;;  %2103 = vmatprep.mubr.msk.bf16.mxu0 %vm2421_vm0, %v2420_v28 }
 0xe5f   :  { %2101 = vmatprep.subr.bf16.mxu0 %v2420_v28 }
 0xe66   :  { %2102 = vmatpush3.bf16.xpose.msra.mxu0 %v1499_v38 }
 0xe6d   :  { %2104 = vmatmul.mubr.msk.bf16.vlgmr.msra.gmra.mrb[40].mxu0 %vm539_vm1, %v1487_v42 }
 0xf30   :  { %v1469_v39 = vpop.f32.mrb[36].mxu0 }
 0xf31   :  { %v2097_v40 = vpop.f32.mrb[37].mxu0 }
 0xf32   :  { %v1472_v41 = vpop.f32.mrb[38].mxu0 }
 0xf33   :  { %v2098_v43 = vpop.f32.mrb[39].mxu0 }
 0xf40   :  { %v1535_v45 = vpop.f32.mrb[40].mxu0 }
 0xf41   :  { %v2105_v47 = vpop.f32.mrb[41].mxu0  ;;  %v1542_v48 = vsel %vm539_vm1, %v1535_v45, -inf }
 0xf42   :  { %1543 = vmax.xlane.f32.xlu0 %v1542_v48  ;;  %v1538_v50 = vpop.f32.mrb[42].mxu0 }
 0xf43   :  { %v2106_v44 = vpop.f32.mrb[43].mxu0  ;;  %v1545_v52 = vsel %vm539_vm1, %v1538_v50, -inf }
 0xf44   :  { %1546 = vmax.xlane.f32.xlu1 %v1545_v52 }
 0xf55   :  { %1567 = vrot.lane.b32.xlu1 %v2647_v55, %s2423_s7 }
 0xf59   :  { %795 = vrot.lane.b32.xlu1 %v2709_v13, %s2423_s7 }
 0xf5d   :  { %797 = vrot.lane.b32.xlu1 %v2711_v15, %s2423_s7 }
 0xf61   :  { %937 = vrot.lane.b32.xlu1 %v2715_v19, %s2415_s14 }
 0xf65   :  { %1341 = vrot.lane.b32.xlu1 %v2794_v6, %s2423_s7 }
 0xf69   :  { %1077 = vrot.lane.b32.xlu1 %v2742_v53, %s2422_s5 }
 0xf6d   :  { %1480 = vrot.lane.b32.xlu1 %v1472_v41, %s2415_s14 }
 0xfcf   :  { %v1544_v54 = vpop.xlane.xlu0 %1543 }
 0xfd0   :  { %v1548_v59 = vsub.f32 %v1535_v45, %v1544_v54 }
 0xfd1   :  { %v1547_v55 = vpop.xlane.xlu1 %1546 }
 0xfd2   :  { %v1550_v49 = vmul.f32 1.442695, %v1548_v59  ;;  %v1549_v60 = vsub.f32 %v1538_v50, %v1547_v55 }
 0xfd4   :  { %2238 = vpow2.f32 %v1550_v49  ;;  %v1552_v13 = vmul.f32 1.442695, %v1549_v60 }
 0xfd5   :  { %v1568_v61 = vpop.permute.xlu1 %1567 }
 0xfd6   :  { %2240 = vpow2.f32 %v1552_v13 }
 0xfd9   :  { %v796_v15 = vpop.permute.xlu1 %795 }
 0xfda   :  { %802 = vst.msk [vmem:[#allocation2] sm:$0xff] %vm801_vm2, %v796_v15 }
 0xfdd   :  { %v798_v19 = vpop.permute.xlu1 %797 }
 0xfde   :  { %v2239_v57 = vpop.eup %2238  ;;  %803 = vst.msk [vmem:[#allocation2 + $0x8] sm:$0xff] %vm801_vm2, %v798_v19 }
 0xfdf   :  { %v1554_v53 = vsel %vm539_vm1, %v2239_v57, 0.0 }
 0xfe0   :  { %v2241_v62 = vpop.eup %2240  ;;  %1555 = vadd.xlane.f32.xlu0 %v1554_v53 }
 0xfe1   :  { %v938_v46 = vpop.permute.xlu1 %937  ;;  %v1557_v63 = vsel %vm539_vm1, %v2241_v62, 0.0 }
 0xfe2   :  { %943 = vst.msk [vmem:[#allocation2 + $0x8] sm:$0xff] %vm941_vm3, %v938_v46 }
 0xfe4   :  { %1558 = vadd.xlane.f32.xlu0 %v1557_v63 }
 0xfe5   :  { %v1342_v0 = vpop.permute.xlu1 %1341 }
 0xfe6   :  { %1346 = vst.msk [vmem:[#allocation2 + $0x18] sm:$0xff] %vm801_vm2, %v1342_v0 }
 0xfe9   :  { %v1078_v1 = vpop.permute.xlu1 %1077 }
 0xfea   :  { %1083 = vst.msk [vmem:[#allocation2 + $0x8] sm:$0xff] %vm1081_vm4, %v1078_v1 }
 0xfed   :  { %v1481_v5 = vpop.permute.xlu1 %1480 }
 0xfee   :  { %1485 = vst.msk [vmem:[#allocation2 + $0x18] sm:$0xff] %vm941_vm3, %v1481_v5 }
 0xff1   :  { %v1626_v16 = vld [vmem:[#allocation2 + $0x8] sm:$0xff] }
 0xffa   :  { %1565 = vrot.lane.b32.xlu0 %v2649_v58, %s2423_s7 }
 0xffe   :  { %935 = vrot.lane.b32.xlu0 %v2713_v17, %s2415_s14 }
0x1002   :  { %1339 = vrot.lane.b32.xlu0 %v2792_v2, %s2423_s7 }
0x1006   :  { %1075 = vrot.lane.b32.xlu0 %v2740_v51, %s2422_s5 }
0x100a   :  { %1478 = vrot.lane.b32.xlu0 %v1469_v39, %s2415_s14 }
0x106d   :  { %v1556_v6 = vpop.xlane.xlu0 %1555 }
0x106e   :  { %2242 = vrcp.f32 %v1556_v6 }
0x1071   :  { %v1559_v7 = vpop.xlane.xlu0 %1558 }
0x1072   :  { %2244 = vrcp.f32 %v1559_v7 }
0x1075   :  { %v1566_v8 = vpop.permute.xlu0 %1565 }
0x1076   :  { %2108 = vmatpush3.bf16.msra.mxu1 %v1566_v8 }
0x1077   :  { %2109 = vmatprep.subr.bf16.mxu1 %v2420_v28 }
0x1078   :  { %v2243_v9 = vpop.eup %2242 }
0x1079   :  { %v936_v58 = vpop.permute.xlu0 %935  ;;  %v1562_v2 = vmul.f32 %v2243_v9, %v2239_v57 }
0x107a   :  { %942 = vst.msk [vmem:[#allocation2] sm:$0xff] %vm941_vm3, %v936_v58  ;;  %2110 = vmatpush3.bf16.msra.mxu1 %v1568_v61 }
0x107b   :  { %2115 = vmatprep.subr.bf16.mxu1 %v2174_v20 }
0x107c   :  { %v2245_v17 = vpop.eup %2244 }
0x107d   :  { %v1563_v10 = vmul.f32 %v2245_v17, %v2241_v62  ;;  %v1340_v11 = vpop.permute.xlu0 %1339 }
0x107e   :  { %1345 = vst.msk [vmem:[#allocation2 + $0x10] sm:$0xff] %vm801_vm2, %v1340_v11 }
0x107f   :  { %v1564_v51 = vpack.c.bf16 %v1563_v10, %v1562_v2 }
0x1081   :  { %v1076_v12 = vpop.permute.xlu0 %1075  ;;  %2112 = vmatmul.mubr.msk.bf16.vlgmr.msra.gmra.mrb[36].mxu1 %vm539_vm1, %v1564_v51 }
0x1082   :  { %1082 = vst.msk [vmem:[#allocation2] sm:$0xff] %vm1081_vm4, %v1076_v12  ;;  %2116 = vmatpush3.bf16.msra.mxu1 %v2174_v20 }
0x1083   :  { %2117 = vmatprep.subr.bf16.mxu1 %v2175_v21 }
0x1085   :  { %v1479_v14 = vpop.permute.xlu0 %1478 }
0x1086   :  { %1484 = vst.msk [vmem:[#allocation2 + $0x10] sm:$0xff] %vm941_vm3, %v1479_v14  ;;  %2118 = vmatpush3.bf16.msra.mxu1 %v2175_v21 }
0x1087   :  { %2119 = vmatprep.subr.bf16.mxu1 %v2176_v22 }
0x1089   :  { %v1625_v28 = vld [vmem:[#allocation2] sm:$0xff] }
0x108a   :  { %v1629_v18 = vpack.c.bf16 %v1626_v16, %v1625_v28  ;;  %2120 = vmatpush3.bf16.msra.mxu1 %v2176_v22 }
0x108b   :  { %2121 = vmatprep.subr.bf16.mxu1 %v2177_v23 }
0x108c   :  { %2131 = vmatprep.mubr.bf16.mxu1 %v1629_v18 }
0x108e   :  { %2122 = vmatpush3.bf16.msra.mxu1 %v2177_v23 }
0x108f   :  { %2123 = vmatprep.subr.bf16.mxu1 %v2178_v24 }
0x1092   :  { %2124 = vmatpush3.bf16.msra.mxu1 %v2178_v24 }
0x1093   :  { %2125 = vmatprep.subr.bf16.mxu1 %v2179_v25 }
0x1096   :  { %2126 = vmatpush3.bf16.msra.mxu1 %v2179_v25 }
0x1097   :  { %2127 = vmatprep.subr.bf16.mxu1 %v2180_v4 }
0x109a   :  { %2128 = vmatpush3.bf16.msra.mxu1 %v2180_v4 }
0x109b   :  { %2129 = vmatprep.subr.bf16.mxu1 %v2181_v26 }
0x109e   :  { %2130 = vmatpush3.bf16.msra.mxu1 %v2181_v26 }
0x1154   :  { %v1608_v3 = vpop.f32.mrb[36].mxu1 }
0x1155   :  { %1617 = vrot.lane.b32.xlu0 %v1608_v3, %s2422_s5  ;;  %v2113_v56 = vpop.f32.mrb[37].mxu1 }
0x1156   :  { %v1611_v27 = vpop.f32.mrb[38].mxu1 }
0x1157   :  { %1619 = vrot.lane.b32.xlu1 %v1611_v27, %s2422_s5  ;;  %v2114_v29 = vpop.f32.mrb[39].mxu1 }
0x11c7   :  { %v1618_v30 = vpop.permute.xlu0 %1617 }
0x11c8   :  { %1623 = vst.msk [vmem:[#allocation2 + $0x10] sm:$0xff] %vm1081_vm4, %v1618_v30 }
0x11c9   :  { %v1620_v31 = vpop.permute.xlu1 %1619 }
0x11ca   :  { %1624 = vst.msk [vmem:[#allocation2 + $0x18] sm:$0xff] %vm1081_vm4, %v1620_v31 }
0x11cf   :  { %v1627_v32 = vld [vmem:[#allocation2 + $0x10] sm:$0xff] }
0x11d1   :  { %v1628_v33 = vld [vmem:[#allocation2 + $0x18] sm:$0xff] }
0x11d2   :  { %v1630_v34 = vpack.c.bf16 %v1628_v33, %v1627_v32 }
0x11d4   :  { %2132 = vmatmul.mubr.bf16.vlgmr.msra.gmra.mrb[40].mxu1 %v1630_v34 }
0x12a7   :  { %v2133_v36 = vpop.f32.mrb[40].mxu1 }
0x12a8   :  { %v1745_v37 = vadd.f32 %v2133_v36, %v1818_v35  ;;  %v1736_v38 = vpop.f32.mrb[41].mxu1 }
0x12a9   :  { %v1737_v42 = vadd.f32 %v1818_v35, %v1736_v38  ;;  %v2134_v39 = vpop.f32.mrb[42].mxu1 }
0x12aa   :  { %1753 = vst [vmem:[#allocation14 + $0x10] sm:$0xff] %v1745_v37  ;;  %v1748_v40 = vadd.f32 %v2134_v39, %v1818_v35  ;;  %v1739_v41 = vpop.f32.mrb[43].mxu1 }
0x12ab   :  { %1751 = vst [vmem:[#allocation14] sm:$0xff] %v1737_v42  ;;  %v1740_v43 = vadd.f32 %v1818_v35, %v1739_v41 }
0x12ac   :  { %1754 = vst [vmem:[#allocation14 + $0x18] sm:$0xff] %v1748_v40 }
0x12ad   :  { %1752 = vst [vmem:[#allocation14 + $0x8] sm:$0xff] %v1740_v43 }
0x12ae   :  { %2389 = shalt.err (!%p2386_p10)
}
0x12af   :  { %s2390_s16 = scalar_lea.hbm %s2889_s10, 512 }
0x12b0   :  { %p2391_p11 = scmp.ne.s32.totalorder %s2889_s10, %s2390_s16  ;;  %p2394_p12 = scmp.lt.u32.totalorder %s2390_s16, %s2889_s10 }
0x12b2   :  { %p2396_p13 = pnand %p2394_p12, %p2391_p11 }
0x12b4   :  { %2399 = shalt.err (!%p2396_p13)
}
0x12b5   :  { %1766 = dma.vmem_to_hbm [thread:$0]  %s1761_s17, 512, %s2889_s10, [#allocation5], %s2411_s23, %s2411_s23, %s2412_s24  }
0x12b6   :  { %2408 = dma.done.wait [#allocation5], 512  }
0x12b7   :  { %2409 = vsyncadd [#allocation5], 4294966784 }
0x12b8   :  { %1770 = vsyncpa [#allocation4], 1 }
0x12b9   :  { %1771 = vsyncpa [#allocation7], 1 }
0x12ba   :  { %1772 = vsyncpa [#allocation10], 1 }
0x12bb   :  { %1773 = vsyncpa [#allocation13], 1 }
0x12bc   :  { %1774 = vsyncpa [#allocation5], 1 }

</bundles_post_ra>
